<compile_context>
chip_gen: v6e
topology: v6e:2x2x1
jax: 0.10.0
libtpu: 0.0.40
codegen_flags: <defaults>
</compile_context>

<pallas_src>
import jax
import jax.numpy as jnp
from jax.experimental import pallas as pl
from jax.experimental.pallas import tpu as pltpu

EMBED = 80
HIDDEN = 40
FC1 = 64
OUT = 5
NGATES = 4
GLANES = 128                  # lane-padded width per gate (vreg boundary)
PACKED = NGATES * GLANES      # 512


def _sigmoid(x):
    # Single EUP op (tanh) + cheap VPU scale/add, instead of exp + divide.
    return 0.5 * jnp.tanh(0.5 * x) + 0.5


def lstm_mlp_kernel(tok_ref, proj_ref, whh_ref,
                    w1_ref, b1_ref, w2_ref, b2_ref, o_ref, gx_buf):
    """tok_ref : (S, B) int32 token ids, SMEM.
    proj_ref: (num, 512) f32 = emb @ W_ih^T + b_ih + b_hh, gate g packed into
              lanes [g*128, g*128+40), zeros elsewhere.
    whh_ref : (128, 512) bf16 recurrent weights, same per-gate lane packing
              (rows >= 40 are zero; they meet the zero padding lanes of h).
    w1_ref  : (128, 128) f32 (rows>=40 / cols>=64 zero); b1_ref: (1, 128) f32.
    w2_ref  : (128, 128) f32 (rows>=64 / cols>=5  zero); b2_ref: (1, 128) f32.
    o_ref   : (Bpad, 128) f32; real result in [:B, :5].
    gx_buf  : (Bpad, 512) f32 VMEM scratch for the per-step gathered gates.
    """
    S, B = tok_ref.shape
    Bpad = o_ref.shape[0]

    # Hoist the constant recurrent weights (JAX does not CSE repeated loads).
    whh = whh_ref[...]

    # Rows >= B stay zero for all steps -> padded batch rows remain exactly 0.
    gx_buf[...] = jnp.zeros_like(gx_buf)

    h = jnp.zeros((Bpad, GLANES), jnp.float32)
    c = jnp.zeros((Bpad, GLANES), jnp.float32)

    # S is static and tiny: the Python loop fully unrolls the recurrence so
    # the scheduler sees the whole serial chain.
    for t in range(S):
        # In-kernel gather of the pre-projected (lane-packed) input gates.
        for b in range(B):
            gx_buf[pl.ds(b, 1), :] = proj_ref[pl.ds(tok_ref[t, b], 1), :]
        gx = gx_buf[...]                                       # (Bpad, 512)

        # One gate-fused recurrent matmul (bf16 operands, f32 accumulate).
        gates = jnp.dot(h.astype(jnp.bfloat16), whh,
                        preferred_element_type=jnp.float32) + gx

        # PyTorch gate order i, f, g, o; slices are free vreg boundaries.
        i_g = _sigmoid(gates[:, 0 * GLANES:1 * GLANES])
        f_g = _sigmoid(gates[:, 1 * GLANES:2 * GLANES])
        g_g = jnp.tanh(gates[:, 2 * GLANES:3 * GLANES])
        o_g = _sigmoid(gates[:, 3 * GLANES:4 * GLANES])
        c = f_g * c + i_g * g_g
        h = o_g * jnp.tanh(c)
        # Lanes >= 40 of h/c stay exactly 0 (zero-padded weights and gx), so
        # no masking is needed anywhere in the loop.

    # MLP head on the final hidden state (runs once; f32 matmuls).
    lastx = jnp.tanh(h)                                              # F.tanh
    z1 = jnp.dot(lastx, w1_ref[...],
                 preferred_element_type=jnp.float32) + b1_ref[...]   # lf1
    z1 = jnp.where(z1 > 0, z1, 0.01 * z1)                            # leaky_relu
    z2 = jnp.dot(z1, w2_ref[...],
                 preferred_element_type=jnp.float32) + b2_ref[...]   # lf2
    o_ref[...] = z2.astype(o_ref.dtype)


def net_forward(tokens, params):
    """tokens: int32 (S, B), seq-first (PyTorch nn.LSTM default). -> (B, OUT)."""
    S, B = tokens.shape
    b_pad = max(8, ((B + 7) // 8) * 8)   # full 8-sublane tiles in the kernel

    vmem = pl.BlockSpec(memory_space=pltpu.MemorySpace.VMEM)
    smem = pl.BlockSpec(memory_space=pltpu.MemorySpace.SMEM)
    out = pl.pallas_call(
        lstm_mlp_kernel,
        out_shape=jax.ShapeDtypeStruct((b_pad, GLANES), jnp.float32),
        in_specs=[smem] + [vmem] * 6,
        out_specs=vmem,
        scratch_shapes=[pltpu.VMEM((b_pad, PACKED), jnp.float32)],
    )(tokens.astype(jnp.int32),
      params["proj_packed"], params["whh_packed"],
      params["w1_p"], params["b1_p"], params["w2_p"], params["b2_p"])
    return out[:B, :OUT]


def init_params(key, num_embeddings):
    ks = jax.random.split(key, 8)
    scale = 0.1
    emb = jax.random.normal(ks[0], (num_embeddings, EMBED), jnp.float32)
    # PyTorch LSTM weights are (4H, in); store transposed for x @ W.T layout.
    w_ih = scale * jax.random.normal(ks[1], (4 * HIDDEN, EMBED), jnp.float32)
    w_hh = scale * jax.random.normal(ks[2], (4 * HIDDEN, HIDDEN), jnp.float32)
    b_ih = scale * jax.random.normal(ks[3], (4 * HIDDEN,), jnp.float32)
    b_hh = scale * jax.random.normal(ks[4], (4 * HIDDEN,), jnp.float32)
    w1 = scale * jax.random.normal(ks[5], (FC1, HIDDEN), jnp.float32)
    b1 = scale * jax.random.normal(ks[6], (FC1,), jnp.float32)
    w2 = scale * jax.random.normal(ks[7], (OUT, FC1), jnp.float32)
    b2 = jnp.zeros((OUT,), jnp.float32)

    w_ih_t = w_ih.T                               # (EMBED, 4H)
    w_hh_t = w_hh.T                               # (H, 4H)
    b_lstm = (b_ih + b_hh)[None, :]               # (1, 4H)

    H = HIDDEN
    # Fold embedding lookup + input projection + biases into one table.
    proj_table = emb @ w_ih_t + b_lstm            # (num, 4H)

    # Lane-pack per gate into [g*128, g*128+H); zeros elsewhere.  Done once at
    # init so no lane-unaligned slicing happens on the forward path.
    proj_packed = jnp.zeros((num_embeddings, PACKED), jnp.float32)
    whh_packed = jnp.zeros((GLANES, PACKED), jnp.float32)
    for g in range(NGATES):
        proj_packed = proj_packed.at[:, g * GLANES:g * GLANES + H].set(
            proj_table[:, g * H:(g + 1) * H])
        whh_packed = whh_packed.at[:H, g * GLANES:g * GLANES + H].set(
            w_hh_t[:, g * H:(g + 1) * H])

    # Zero-padded, lane-dense MLP head weights (rows/cols beyond the real
    # sizes are zero, so the padding lanes never contaminate real outputs).
    w1_p = jnp.zeros((GLANES, GLANES), jnp.float32).at[:H, :FC1].set(w1.T)
    b1_p = jnp.zeros((1, GLANES), jnp.float32).at[0, :FC1].set(b1)
    w2_p = jnp.zeros((GLANES, GLANES), jnp.float32).at[:FC1, :OUT].set(w2.T)
    b2_p = jnp.zeros((1, GLANES), jnp.float32).at[0, :OUT].set(b2)

    return {
        # Reference-path params (match the PyTorch layout).
        "emb": emb, "w_ih_t": w_ih_t, "w_hh_t": w_hh_t, "b_lstm": b_lstm,
        "w1_t": w1.T, "b1": b1[None, :], "w2_t": w2.T, "b2": b2[None, :],
        # Kernel-path params (pre-projected / gate-fused / lane-packed).
        "proj_packed": proj_packed,
        "whh_packed": whh_packed.astype(jnp.bfloat16),
        "w1_p": w1_p, "b1_p": b1_p, "w2_p": w2_p, "b2_p": b2_p,
    }


def net_reference(tokens, params):
    """Pure-JAX f32 reference of the PyTorch forward (correctness check)."""
    x = params["emb"][tokens]  # (S, B, E)
    S, B, _ = x.shape
    h = jnp.zeros((B, HIDDEN), jnp.float32)
    c = jnp.zeros((B, HIDDEN), jnp.float32)
    for t in range(S):
        gates = x[t] @ params["w_ih_t"] + h @ params["w_hh_t"] + params["b_lstm"]
        i = jax.nn.sigmoid(gates[:, 0 * HIDDEN:1 * HIDDEN])
        f = jax.nn.sigmoid(gates[:, 1 * HIDDEN:2 * HIDDEN])
        g = jnp.tanh(gates[:, 2 * HIDDEN:3 * HIDDEN])
        o = jax.nn.sigmoid(gates[:, 3 * HIDDEN:4 * HIDDEN])
        c = f * c + i * g
        h = o * jnp.tanh(c)
    lastx = jnp.tanh(h)
    z1 = lastx @ params["w1_t"] + params["b1"]
    z1 = jnp.where(z1 > 0, z1, 0.01 * z1)
    return z1 @ params["w2_t"] + params["b2"]


if __name__ == "__main__":
    NUM = 50      # vocab size (the `num` constructor arg)
    S, B = 8, 2   # seq_len, batch

    key = jax.random.PRNGKey(0)
    pkey, tkey = jax.random.split(key)
    params = init_params(pkey, NUM)
    tokens = jax.random.randint(tkey, (S, B), 0, NUM, dtype=jnp.int32)

    out = net_forward(tokens, params)
    out = jax.block_until_ready(out)

    ref = net_reference(tokens, params)
    assert out.shape == (B, OUT)
    # bf16 recurrent-matmul operands -> loosened tolerance vs the f32 reference.
    assert jnp.allclose(out, ref, atol=2e-2, rtol=2e-2), "mismatch vs reference"

    print("KERNEL_OK")
</pallas_src>

<mosaic_0001>
module attributes {stable_mosaic.version = 11 : i64} {
  func.func @lstm_mlp_kernel(%arg0: memref<8x2xi32, #tpu.memory_space<smem>>, %arg1: memref<50x512xf32, #tpu.memory_space<vmem>>, %arg2: memref<128x512xbf16, #tpu.memory_space<vmem>>, %arg3: memref<128x128xf32, #tpu.memory_space<vmem>>, %arg4: memref<1x128xf32, #tpu.memory_space<vmem>>, %arg5: memref<128x128xf32, #tpu.memory_space<vmem>>, %arg6: memref<1x128xf32, #tpu.memory_space<vmem>>, %arg7: memref<8x128xf32, #tpu.memory_space<vmem>>, %arg8: memref<8x512xf32, #tpu.memory_space<vmem>>) attributes {dimension_semantics = [], scalar_prefetch = 0 : i64, scratch_operands = 1 : i64, tpu.core_type = #tpu.core_type<tc>} {
    %c0 = arith.constant 0 : index
    %c0_0 = arith.constant 0 : index
    %0 = vector.load %arg2[%c0, %c0_0] : memref<128x512xbf16, #tpu.memory_space<vmem>>, vector<128x512xbf16>
    %cst = arith.constant 0.000000e+00 : f32
    %1 = vector.broadcast %cst : f32 to vector<8x512xf32>
    %c0_1 = arith.constant 0 : index
    %c0_2 = arith.constant 0 : index
    %2 = vector.load %arg8[%c0_1, %c0_2] : memref<8x512xf32, #tpu.memory_space<vmem>>, vector<8x512xf32>
    tpu.vector_store %arg8[%c0_1, %c0_2], %1 {strides = array<i32>} : memref<8x512xf32, #tpu.memory_space<vmem>>, vector<8x512xf32>,
    %cst_3 = arith.constant 0.000000e+00 : f32
    %3 = vector.broadcast %cst_3 : f32 to vector<8x128xf32>
    %cst_4 = arith.constant 0.000000e+00 : f32
    %4 = vector.broadcast %cst_4 : f32 to vector<8x128xf32>
    %c0_5 = arith.constant 0 : index
    %c0_6 = arith.constant 0 : index
    %5 = memref.load %arg0[%c0_5, %c0_6] : memref<8x2xi32, #tpu.memory_space<smem>>
    %6 = arith.index_cast %5 : i32 to index
    %c0_7 = arith.constant 0 : index
    %7 = vector.load %arg1[%6, %c0_7] : memref<50x512xf32, #tpu.memory_space<vmem>>, vector<1x512xf32>
    %c0_8 = arith.constant 0 : index
    %c0_9 = arith.constant 0 : index
    %8 = vector.load %arg8[%c0_8, %c0_9] : memref<8x512xf32, #tpu.memory_space<vmem>>, vector<1x512xf32>
    tpu.vector_store %arg8[%c0_8, %c0_9], %7 {strides = array<i32>} : memref<8x512xf32, #tpu.memory_space<vmem>>, vector<1x512xf32>,
    %c0_10 = arith.constant 0 : index
    %c1 = arith.constant 1 : index
    %9 = memref.load %arg0[%c0_10, %c1] : memref<8x2xi32, #tpu.memory_space<smem>>
    %10 = arith.index_cast %9 : i32 to index
    %c0_11 = arith.constant 0 : index
    %11 = vector.load %arg1[%10, %c0_11] : memref<50x512xf32, #tpu.memory_space<vmem>>, vector<1x512xf32>
    %c1_12 = arith.constant 1 : index
    %c0_13 = arith.constant 0 : index
    %12 = vector.load %arg8[%c1_12, %c0_13] : memref<8x512xf32, #tpu.memory_space<vmem>>, vector<1x512xf32>
    tpu.vector_store %arg8[%c1_12, %c0_13], %11 {strides = array<i32>} : memref<8x512xf32, #tpu.memory_space<vmem>>, vector<1x512xf32>,
    %c0_14 = arith.constant 0 : index
    %c0_15 = arith.constant 0 : index
    %13 = vector.load %arg8[%c0_14, %c0_15] : memref<8x512xf32, #tpu.memory_space<vmem>>, vector<8x512xf32>
    %14 = arith.truncf %3 : vector<8x128xf32> to vector<8x128xbf16>
    %cst_16 = arith.constant dense<0.000000e+00> : vector<8x512xf32>
    %15 = tpu.matmul %14, %0, %cst_16 {dimension_numbers = #tpu.dot_dimension_numbers<[1], [0], [0], [1], [0, 0, 1, 1], [], []>} : vector<8x128xbf16>, vector<128x512xbf16>, vector<8x512xf32> -> vector<8x512xf32>
    %16 = arith.addf %15, %13 : vector<8x512xf32>
    %17 = vector.extract_strided_slice %16 {offsets = [0, 0], sizes = [8, 128], strides = [1, 1]} : vector<8x512xf32> to vector<8x128xf32>
    %cst_17 = arith.constant 5.000000e-01 : f32
    %18 = vector.broadcast %cst_17 : f32 to vector<8x128xf32>
    %19 = arith.mulf %18, %17 : vector<8x128xf32>
    %20 = math.tanh %19 : vector<8x128xf32>
    %cst_18 = arith.constant 5.000000e-01 : f32
    %21 = vector.broadcast %cst_18 : f32 to vector<8x128xf32>
    %22 = arith.mulf %21, %20 : vector<8x128xf32>
    %cst_19 = arith.constant 5.000000e-01 : f32
    %23 = vector.broadcast %cst_19 : f32 to vector<8x128xf32>
    %24 = arith.addf %22, %23 : vector<8x128xf32>
    %25 = vector.extract_strided_slice %16 {offsets = [0, 128], sizes = [8, 128], strides = [1, 1]} : vector<8x512xf32> to vector<8x128xf32>
    %cst_20 = arith.constant 5.000000e-01 : f32
    %26 = vector.broadcast %cst_20 : f32 to vector<8x128xf32>
    %27 = arith.mulf %26, %25 : vector<8x128xf32>
    %28 = math.tanh %27 : vector<8x128xf32>
    %cst_21 = arith.constant 5.000000e-01 : f32
    %29 = vector.broadcast %cst_21 : f32 to vector<8x128xf32>
    %30 = arith.mulf %29, %28 : vector<8x128xf32>
    %cst_22 = arith.constant 5.000000e-01 : f32
    %31 = vector.broadcast %cst_22 : f32 to vector<8x128xf32>
    %32 = arith.addf %30, %31 : vector<8x128xf32>
    %33 = vector.extract_strided_slice %16 {offsets = [0, 256], sizes = [8, 128], strides = [1, 1]} : vector<8x512xf32> to vector<8x128xf32>
    %34 = math.tanh %33 : vector<8x128xf32>
    %35 = vector.extract_strided_slice %16 {offsets = [0, 384], sizes = [8, 128], strides = [1, 1]} : vector<8x512xf32> to vector<8x128xf32>
    %cst_23 = arith.constant 5.000000e-01 : f32
    %36 = vector.broadcast %cst_23 : f32 to vector<8x128xf32>
    %37 = arith.mulf %36, %35 : vector<8x128xf32>
    %38 = math.tanh %37 : vector<8x128xf32>
    %cst_24 = arith.constant 5.000000e-01 : f32
    %39 = vector.broadcast %cst_24 : f32 to vector<8x128xf32>
    %40 = arith.mulf %39, %38 : vector<8x128xf32>
    %cst_25 = arith.constant 5.000000e-01 : f32
    %41 = vector.broadcast %cst_25 : f32 to vector<8x128xf32>
    %42 = arith.addf %40, %41 : vector<8x128xf32>
    %43 = arith.mulf %32, %4 : vector<8x128xf32>
    %44 = arith.mulf %24, %34 : vector<8x128xf32>
    %45 = arith.addf %43, %44 : vector<8x128xf32>
    %46 = math.tanh %45 : vector<8x128xf32>
    %47 = arith.mulf %42, %46 : vector<8x128xf32>
    %c1_26 = arith.constant 1 : index
    %c0_27 = arith.constant 0 : index
    %48 = memref.load %arg0[%c1_26, %c0_27] : memref<8x2xi32, #tpu.memory_space<smem>>
    %49 = arith.index_cast %48 : i32 to index
    %c0_28 = arith.constant 0 : index
    %50 = vector.load %arg1[%49, %c0_28] : memref<50x512xf32, #tpu.memory_space<vmem>>, vector<1x512xf32>
    %c0_29 = arith.constant 0 : index
    %c0_30 = arith.constant 0 : index
    %51 = vector.load %arg8[%c0_29, %c0_30] : memref<8x512xf32, #tpu.memory_space<vmem>>, vector<1x512xf32>
    tpu.vector_store %arg8[%c0_29, %c0_30], %50 {strides = array<i32>} : memref<8x512xf32, #tpu.memory_space<vmem>>, vector<1x512xf32>,
    %c1_31 = arith.constant 1 : index
    %c1_32 = arith.constant 1 : index
    %52 = memref.load %arg0[%c1_31, %c1_32] : memref<8x2xi32, #tpu.memory_space<smem>>
    %53 = arith.index_cast %52 : i32 to index
    %c0_33 = arith.constant 0 : index
    %54 = vector.load %arg1[%53, %c0_33] : memref<50x512xf32, #tpu.memory_space<vmem>>, vector<1x512xf32>
    %c1_34 = arith.constant 1 : index
    %c0_35 = arith.constant 0 : index
    %55 = vector.load %arg8[%c1_34, %c0_35] : memref<8x512xf32, #tpu.memory_space<vmem>>, vector<1x512xf32>
    tpu.vector_store %arg8[%c1_34, %c0_35], %54 {strides = array<i32>} : memref<8x512xf32, #tpu.memory_space<vmem>>, vector<1x512xf32>,
    %c0_36 = arith.constant 0 : index
    %c0_37 = arith.constant 0 : index
    %56 = vector.load %arg8[%c0_36, %c0_37] : memref<8x512xf32, #tpu.memory_space<vmem>>, vector<8x512xf32>
    %57 = arith.truncf %47 : vector<8x128xf32> to vector<8x128xbf16>
    %cst_38 = arith.constant dense<0.000000e+00> : vector<8x512xf32>
    %58 = tpu.matmul %57, %0, %cst_38 {dimension_numbers = #tpu.dot_dimension_numbers<[1], [0], [0], [1], [0, 0, 1, 1], [], []>} : vector<8x128xbf16>, vector<128x512xbf16>, vector<8x512xf32> -> vector<8x512xf32>
    %59 = arith.addf %58, %56 : vector<8x512xf32>
    %60 = vector.extract_strided_slice %59 {offsets = [0, 0], sizes = [8, 128], strides = [1, 1]} : vector<8x512xf32> to vector<8x128xf32>
    %cst_39 = arith.constant 5.000000e-01 : f32
    %61 = vector.broadcast %cst_39 : f32 to vector<8x128xf32>
    %62 = arith.mulf %61, %60 : vector<8x128xf32>
    %63 = math.tanh %62 : vector<8x128xf32>
    %cst_40 = arith.constant 5.000000e-01 : f32
    %64 = vector.broadcast %cst_40 : f32 to vector<8x128xf32>
    %65 = arith.mulf %64, %63 : vector<8x128xf32>
    %cst_41 = arith.constant 5.000000e-01 : f32
    %66 = vector.broadcast %cst_41 : f32 to vector<8x128xf32>
    %67 = arith.addf %65, %66 : vector<8x128xf32>
    %68 = vector.extract_strided_slice %59 {offsets = [0, 128], sizes = [8, 128], strides = [1, 1]} : vector<8x512xf32> to vector<8x128xf32>
    %cst_42 = arith.constant 5.000000e-01 : f32
    %69 = vector.broadcast %cst_42 : f32 to vector<8x128xf32>
    %70 = arith.mulf %69, %68 : vector<8x128xf32>
    %71 = math.tanh %70 : vector<8x128xf32>
    %cst_43 = arith.constant 5.000000e-01 : f32
    %72 = vector.broadcast %cst_43 : f32 to vector<8x128xf32>
    %73 = arith.mulf %72, %71 : vector<8x128xf32>
    %cst_44 = arith.constant 5.000000e-01 : f32
    %74 = vector.broadcast %cst_44 : f32 to vector<8x128xf32>
    %75 = arith.addf %73, %74 : vector<8x128xf32>
    %76 = vector.extract_strided_slice %59 {offsets = [0, 256], sizes = [8, 128], strides = [1, 1]} : vector<8x512xf32> to vector<8x128xf32>
    %77 = math.tanh %76 : vector<8x128xf32>
    %78 = vector.extract_strided_slice %59 {offsets = [0, 384], sizes = [8, 128], strides = [1, 1]} : vector<8x512xf32> to vector<8x128xf32>
    %cst_45 = arith.constant 5.000000e-01 : f32
    %79 = vector.broadcast %cst_45 : f32 to vector<8x128xf32>
    %80 = arith.mulf %79, %78 : vector<8x128xf32>
    %81 = math.tanh %80 : vector<8x128xf32>
    %cst_46 = arith.constant 5.000000e-01 : f32
    %82 = vector.broadcast %cst_46 : f32 to vector<8x128xf32>
    %83 = arith.mulf %82, %81 : vector<8x128xf32>
    %cst_47 = arith.constant 5.000000e-01 : f32
    %84 = vector.broadcast %cst_47 : f32 to vector<8x128xf32>
    %85 = arith.addf %83, %84 : vector<8x128xf32>
    %86 = arith.mulf %75, %45 : vector<8x128xf32>
    %87 = arith.mulf %67, %77 : vector<8x128xf32>
    %88 = arith.addf %86, %87 : vector<8x128xf32>
    %89 = math.tanh %88 : vector<8x128xf32>
    %90 = arith.mulf %85, %89 : vector<8x128xf32>
    %c2 = arith.constant 2 : index
    %c0_48 = arith.constant 0 : index
    %91 = memref.load %arg0[%c2, %c0_48] : memref<8x2xi32, #tpu.memory_space<smem>>
    %92 = arith.index_cast %91 : i32 to index
    %c0_49 = arith.constant 0 : index
    %93 = vector.load %arg1[%92, %c0_49] : memref<50x512xf32, #tpu.memory_space<vmem>>, vector<1x512xf32>
    %c0_50 = arith.constant 0 : index
    %c0_51 = arith.constant 0 : index
    %94 = vector.load %arg8[%c0_50, %c0_51] : memref<8x512xf32, #tpu.memory_space<vmem>>, vector<1x512xf32>
    tpu.vector_store %arg8[%c0_50, %c0_51], %93 {strides = array<i32>} : memref<8x512xf32, #tpu.memory_space<vmem>>, vector<1x512xf32>,
    %c2_52 = arith.constant 2 : index
    %c1_53 = arith.constant 1 : index
    %95 = memref.load %arg0[%c2_52, %c1_53] : memref<8x2xi32, #tpu.memory_space<smem>>
    %96 = arith.index_cast %95 : i32 to index
    %c0_54 = arith.constant 0 : index
    %97 = vector.load %arg1[%96, %c0_54] : memref<50x512xf32, #tpu.memory_space<vmem>>, vector<1x512xf32>
    %c1_55 = arith.constant 1 : index
    %c0_56 = arith.constant 0 : index
    %98 = vector.load %arg8[%c1_55, %c0_56] : memref<8x512xf32, #tpu.memory_space<vmem>>, vector<1x512xf32>
    tpu.vector_store %arg8[%c1_55, %c0_56], %97 {strides = array<i32>} : memref<8x512xf32, #tpu.memory_space<vmem>>, vector<1x512xf32>,
    %c0_57 = arith.constant 0 : index
    %c0_58 = arith.constant 0 : index
    %99 = vector.load %arg8[%c0_57, %c0_58] : memref<8x512xf32, #tpu.memory_space<vmem>>, vector<8x512xf32>
    %100 = arith.truncf %90 : vector<8x128xf32> to vector<8x128xbf16>
    %cst_59 = arith.constant dense<0.000000e+00> : vector<8x512xf32>
    %101 = tpu.matmul %100, %0, %cst_59 {dimension_numbers = #tpu.dot_dimension_numbers<[1], [0], [0], [1], [0, 0, 1, 1], [], []>} : vector<8x128xbf16>, vector<128x512xbf16>, vector<8x512xf32> -> vector<8x512xf32>
    %102 = arith.addf %101, %99 : vector<8x512xf32>
    %103 = vector.extract_strided_slice %102 {offsets = [0, 0], sizes = [8, 128], strides = [1, 1]} : vector<8x512xf32> to vector<8x128xf32>
    %cst_60 = arith.constant 5.000000e-01 : f32
    %104 = vector.broadcast %cst_60 : f32 to vector<8x128xf32>
    %105 = arith.mulf %104, %103 : vector<8x128xf32>
    %106 = math.tanh %105 : vector<8x128xf32>
    %cst_61 = arith.constant 5.000000e-01 : f32
    %107 = vector.broadcast %cst_61 : f32 to vector<8x128xf32>
    %108 = arith.mulf %107, %106 : vector<8x128xf32>
    %cst_62 = arith.constant 5.000000e-01 : f32
    %109 = vector.broadcast %cst_62 : f32 to vector<8x128xf32>
    %110 = arith.addf %108, %109 : vector<8x128xf32>
    %111 = vector.extract_strided_slice %102 {offsets = [0, 128], sizes = [8, 128], strides = [1, 1]} : vector<8x512xf32> to vector<8x128xf32>
    %cst_63 = arith.constant 5.000000e-01 : f32
    %112 = vector.broadcast %cst_63 : f32 to vector<8x128xf32>
    %113 = arith.mulf %112, %111 : vector<8x128xf32>
    %114 = math.tanh %113 : vector<8x128xf32>
    %cst_64 = arith.constant 5.000000e-01 : f32
    %115 = vector.broadcast %cst_64 : f32 to vector<8x128xf32>
    %116 = arith.mulf %115, %114 : vector<8x128xf32>
    %cst_65 = arith.constant 5.000000e-01 : f32
    %117 = vector.broadcast %cst_65 : f32 to vector<8x128xf32>
    %118 = arith.addf %116, %117 : vector<8x128xf32>
    %119 = vector.extract_strided_slice %102 {offsets = [0, 256], sizes = [8, 128], strides = [1, 1]} : vector<8x512xf32> to vector<8x128xf32>
    %120 = math.tanh %119 : vector<8x128xf32>
    %121 = vector.extract_strided_slice %102 {offsets = [0, 384], sizes = [8, 128], strides = [1, 1]} : vector<8x512xf32> to vector<8x128xf32>
    %cst_66 = arith.constant 5.000000e-01 : f32
    %122 = vector.broadcast %cst_66 : f32 to vector<8x128xf32>
    %123 = arith.mulf %122, %121 : vector<8x128xf32>
    %124 = math.tanh %123 : vector<8x128xf32>
    %cst_67 = arith.constant 5.000000e-01 : f32
    %125 = vector.broadcast %cst_67 : f32 to vector<8x128xf32>
    %126 = arith.mulf %125, %124 : vector<8x128xf32>
    %cst_68 = arith.constant 5.000000e-01 : f32
    %127 = vector.broadcast %cst_68 : f32 to vector<8x128xf32>
    %128 = arith.addf %126, %127 : vector<8x128xf32>
    %129 = arith.mulf %118, %88 : vector<8x128xf32>
    %130 = arith.mulf %110, %120 : vector<8x128xf32>
    %131 = arith.addf %129, %130 : vector<8x128xf32>
    %132 = math.tanh %131 : vector<8x128xf32>
    %133 = arith.mulf %128, %132 : vector<8x128xf32>
    %c3 = arith.constant 3 : index
    %c0_69 = arith.constant 0 : index
    %134 = memref.load %arg0[%c3, %c0_69] : memref<8x2xi32, #tpu.memory_space<smem>>
    %135 = arith.index_cast %134 : i32 to index
    %c0_70 = arith.constant 0 : index
    %136 = vector.load %arg1[%135, %c0_70] : memref<50x512xf32, #tpu.memory_space<vmem>>, vector<1x512xf32>
    %c0_71 = arith.constant 0 : index
    %c0_72 = arith.constant 0 : index
    %137 = vector.load %arg8[%c0_71, %c0_72] : memref<8x512xf32, #tpu.memory_space<vmem>>, vector<1x512xf32>
    tpu.vector_store %arg8[%c0_71, %c0_72], %136 {strides = array<i32>} : memref<8x512xf32, #tpu.memory_space<vmem>>, vector<1x512xf32>,
    %c3_73 = arith.constant 3 : index
    %c1_74 = arith.constant 1 : index
    %138 = memref.load %arg0[%c3_73, %c1_74] : memref<8x2xi32, #tpu.memory_space<smem>>
    %139 = arith.index_cast %138 : i32 to index
    %c0_75 = arith.constant 0 : index
    %140 = vector.load %arg1[%139, %c0_75] : memref<50x512xf32, #tpu.memory_space<vmem>>, vector<1x512xf32>
    %c1_76 = arith.constant 1 : index
    %c0_77 = arith.constant 0 : index
    %141 = vector.load %arg8[%c1_76, %c0_77] : memref<8x512xf32, #tpu.memory_space<vmem>>, vector<1x512xf32>
    tpu.vector_store %arg8[%c1_76, %c0_77], %140 {strides = array<i32>} : memref<8x512xf32, #tpu.memory_space<vmem>>, vector<1x512xf32>,
    %c0_78 = arith.constant 0 : index
    %c0_79 = arith.constant 0 : index
    %142 = vector.load %arg8[%c0_78, %c0_79] : memref<8x512xf32, #tpu.memory_space<vmem>>, vector<8x512xf32>
    %143 = arith.truncf %133 : vector<8x128xf32> to vector<8x128xbf16>
    %cst_80 = arith.constant dense<0.000000e+00> : vector<8x512xf32>
    %144 = tpu.matmul %143, %0, %cst_80 {dimension_numbers = #tpu.dot_dimension_numbers<[1], [0], [0], [1], [0, 0, 1, 1], [], []>} : vector<8x128xbf16>, vector<128x512xbf16>, vector<8x512xf32> -> vector<8x512xf32>
    %145 = arith.addf %144, %142 : vector<8x512xf32>
    %146 = vector.extract_strided_slice %145 {offsets = [0, 0], sizes = [8, 128], strides = [1, 1]} : vector<8x512xf32> to vector<8x128xf32>
    %cst_81 = arith.constant 5.000000e-01 : f32
    %147 = vector.broadcast %cst_81 : f32 to vector<8x128xf32>
    %148 = arith.mulf %147, %146 : vector<8x128xf32>
    %149 = math.tanh %148 : vector<8x128xf32>
    %cst_82 = arith.constant 5.000000e-01 : f32
    %150 = vector.broadcast %cst_82 : f32 to vector<8x128xf32>
    %151 = arith.mulf %150, %149 : vector<8x128xf32>
    %cst_83 = arith.constant 5.000000e-01 : f32
    %152 = vector.broadcast %cst_83 : f32 to vector<8x128xf32>
    %153 = arith.addf %151, %152 : vector<8x128xf32>
    %154 = vector.extract_strided_slice %145 {offsets = [0, 128], sizes = [8, 128], strides = [1, 1]} : vector<8x512xf32> to vector<8x128xf32>
    %cst_84 = arith.constant 5.000000e-01 : f32
    %155 = vector.broadcast %cst_84 : f32 to vector<8x128xf32>
    %156 = arith.mulf %155, %154 : vector<8x128xf32>
    %157 = math.tanh %156 : vector<8x128xf32>
    %cst_85 = arith.constant 5.000000e-01 : f32
    %158 = vector.broadcast %cst_85 : f32 to vector<8x128xf32>
    %159 = arith.mulf %158, %157 : vector<8x128xf32>
    %cst_86 = arith.constant 5.000000e-01 : f32
    %160 = vector.broadcast %cst_86 : f32 to vector<8x128xf32>
    %161 = arith.addf %159, %160 : vector<8x128xf32>
    %162 = vector.extract_strided_slice %145 {offsets = [0, 256], sizes = [8, 128], strides = [1, 1]} : vector<8x512xf32> to vector<8x128xf32>
    %163 = math.tanh %162 : vector<8x128xf32>
    %164 = vector.extract_strided_slice %145 {offsets = [0, 384], sizes = [8, 128], strides = [1, 1]} : vector<8x512xf32> to vector<8x128xf32>
    %cst_87 = arith.constant 5.000000e-01 : f32
    %165 = vector.broadcast %cst_87 : f32 to vector<8x128xf32>
    %166 = arith.mulf %165, %164 : vector<8x128xf32>
    %167 = math.tanh %166 : vector<8x128xf32>
    %cst_88 = arith.constant 5.000000e-01 : f32
    %168 = vector.broadcast %cst_88 : f32 to vector<8x128xf32>
    %169 = arith.mulf %168, %167 : vector<8x128xf32>
    %cst_89 = arith.constant 5.000000e-01 : f32
    %170 = vector.broadcast %cst_89 : f32 to vector<8x128xf32>
    %171 = arith.addf %169, %170 : vector<8x128xf32>
    %172 = arith.mulf %161, %131 : vector<8x128xf32>
    %173 = arith.mulf %153, %163 : vector<8x128xf32>
    %174 = arith.addf %172, %173 : vector<8x128xf32>
    %175 = math.tanh %174 : vector<8x128xf32>
    %176 = arith.mulf %171, %175 : vector<8x128xf32>
    %c4 = arith.constant 4 : index
    %c0_90 = arith.constant 0 : index
    %177 = memref.load %arg0[%c4, %c0_90] : memref<8x2xi32, #tpu.memory_space<smem>>
    %178 = arith.index_cast %177 : i32 to index
    %c0_91 = arith.constant 0 : index
    %179 = vector.load %arg1[%178, %c0_91] : memref<50x512xf32, #tpu.memory_space<vmem>>, vector<1x512xf32>
    %c0_92 = arith.constant 0 : index
    %c0_93 = arith.constant 0 : index
    %180 = vector.load %arg8[%c0_92, %c0_93] : memref<8x512xf32, #tpu.memory_space<vmem>>, vector<1x512xf32>
    tpu.vector_store %arg8[%c0_92, %c0_93], %179 {strides = array<i32>} : memref<8x512xf32, #tpu.memory_space<vmem>>, vector<1x512xf32>,
    %c4_94 = arith.constant 4 : index
    %c1_95 = arith.constant 1 : index
    %181 = memref.load %arg0[%c4_94, %c1_95] : memref<8x2xi32, #tpu.memory_space<smem>>
    %182 = arith.index_cast %181 : i32 to index
    %c0_96 = arith.constant 0 : index
    %183 = vector.load %arg1[%182, %c0_96] : memref<50x512xf32, #tpu.memory_space<vmem>>, vector<1x512xf32>
    %c1_97 = arith.constant 1 : index
    %c0_98 = arith.constant 0 : index
    %184 = vector.load %arg8[%c1_97, %c0_98] : memref<8x512xf32, #tpu.memory_space<vmem>>, vector<1x512xf32>
    tpu.vector_store %arg8[%c1_97, %c0_98], %183 {strides = array<i32>} : memref<8x512xf32, #tpu.memory_space<vmem>>, vector<1x512xf32>,
    %c0_99 = arith.constant 0 : index
    %c0_100 = arith.constant 0 : index
    %185 = vector.load %arg8[%c0_99, %c0_100] : memref<8x512xf32, #tpu.memory_space<vmem>>, vector<8x512xf32>
    %186 = arith.truncf %176 : vector<8x128xf32> to vector<8x128xbf16>
    %cst_101 = arith.constant dense<0.000000e+00> : vector<8x512xf32>
    %187 = tpu.matmul %186, %0, %cst_101 {dimension_numbers = #tpu.dot_dimension_numbers<[1], [0], [0], [1], [0, 0, 1, 1], [], []>} : vector<8x128xbf16>, vector<128x512xbf16>, vector<8x512xf32> -> vector<8x512xf32>
    %188 = arith.addf %187, %185 : vector<8x512xf32>
    %189 = vector.extract_strided_slice %188 {offsets = [0, 0], sizes = [8, 128], strides = [1, 1]} : vector<8x512xf32> to vector<8x128xf32>
    %cst_102 = arith.constant 5.000000e-01 : f32
    %190 = vector.broadcast %cst_102 : f32 to vector<8x128xf32>
    %191 = arith.mulf %190, %189 : vector<8x128xf32>
    %192 = math.tanh %191 : vector<8x128xf32>
    %cst_103 = arith.constant 5.000000e-01 : f32
    %193 = vector.broadcast %cst_103 : f32 to vector<8x128xf32>
    %194 = arith.mulf %193, %192 : vector<8x128xf32>
    %cst_104 = arith.constant 5.000000e-01 : f32
    %195 = vector.broadcast %cst_104 : f32 to vector<8x128xf32>
    %196 = arith.addf %194, %195 : vector<8x128xf32>
    %197 = vector.extract_strided_slice %188 {offsets = [0, 128], sizes = [8, 128], strides = [1, 1]} : vector<8x512xf32> to vector<8x128xf32>
    %cst_105 = arith.constant 5.000000e-01 : f32
    %198 = vector.broadcast %cst_105 : f32 to vector<8x128xf32>
    %199 = arith.mulf %198, %197 : vector<8x128xf32>
    %200 = math.tanh %199 : vector<8x128xf32>
    %cst_106 = arith.constant 5.000000e-01 : f32
    %201 = vector.broadcast %cst_106 : f32 to vector<8x128xf32>
    %202 = arith.mulf %201, %200 : vector<8x128xf32>
    %cst_107 = arith.constant 5.000000e-01 : f32
    %203 = vector.broadcast %cst_107 : f32 to vector<8x128xf32>
    %204 = arith.addf %202, %203 : vector<8x128xf32>
    %205 = vector.extract_strided_slice %188 {offsets = [0, 256], sizes = [8, 128], strides = [1, 1]} : vector<8x512xf32> to vector<8x128xf32>
    %206 = math.tanh %205 : vector<8x128xf32>
    %207 = vector.extract_strided_slice %188 {offsets = [0, 384], sizes = [8, 128], strides = [1, 1]} : vector<8x512xf32> to vector<8x128xf32>
    %cst_108 = arith.constant 5.000000e-01 : f32
    %208 = vector.broadcast %cst_108 : f32 to vector<8x128xf32>
    %209 = arith.mulf %208, %207 : vector<8x128xf32>
    %210 = math.tanh %209 : vector<8x128xf32>
    %cst_109 = arith.constant 5.000000e-01 : f32
    %211 = vector.broadcast %cst_109 : f32 to vector<8x128xf32>
    %212 = arith.mulf %211, %210 : vector<8x128xf32>
    %cst_110 = arith.constant 5.000000e-01 : f32
    %213 = vector.broadcast %cst_110 : f32 to vector<8x128xf32>
    %214 = arith.addf %212, %213 : vector<8x128xf32>
    %215 = arith.mulf %204, %174 : vector<8x128xf32>
    %216 = arith.mulf %196, %206 : vector<8x128xf32>
    %217 = arith.addf %215, %216 : vector<8x128xf32>
    %218 = math.tanh %217 : vector<8x128xf32>
    %219 = arith.mulf %214, %218 : vector<8x128xf32>
    %c5 = arith.constant 5 : index
    %c0_111 = arith.constant 0 : index
    %220 = memref.load %arg0[%c5, %c0_111] : memref<8x2xi32, #tpu.memory_space<smem>>
    %221 = arith.index_cast %220 : i32 to index
    %c0_112 = arith.constant 0 : index
    %222 = vector.load %arg1[%221, %c0_112] : memref<50x512xf32, #tpu.memory_space<vmem>>, vector<1x512xf32>
    %c0_113 = arith.constant 0 : index
    %c0_114 = arith.constant 0 : index
    %223 = vector.load %arg8[%c0_113, %c0_114] : memref<8x512xf32, #tpu.memory_space<vmem>>, vector<1x512xf32>
    tpu.vector_store %arg8[%c0_113, %c0_114], %222 {strides = array<i32>} : memref<8x512xf32, #tpu.memory_space<vmem>>, vector<1x512xf32>,
    %c5_115 = arith.constant 5 : index
    %c1_116 = arith.constant 1 : index
    %224 = memref.load %arg0[%c5_115, %c1_116] : memref<8x2xi32, #tpu.memory_space<smem>>
    %225 = arith.index_cast %224 : i32 to index
    %c0_117 = arith.constant 0 : index
    %226 = vector.load %arg1[%225, %c0_117] : memref<50x512xf32, #tpu.memory_space<vmem>>, vector<1x512xf32>
    %c1_118 = arith.constant 1 : index
    %c0_119 = arith.constant 0 : index
    %227 = vector.load %arg8[%c1_118, %c0_119] : memref<8x512xf32, #tpu.memory_space<vmem>>, vector<1x512xf32>
    tpu.vector_store %arg8[%c1_118, %c0_119], %226 {strides = array<i32>} : memref<8x512xf32, #tpu.memory_space<vmem>>, vector<1x512xf32>,
    %c0_120 = arith.constant 0 : index
    %c0_121 = arith.constant 0 : index
    %228 = vector.load %arg8[%c0_120, %c0_121] : memref<8x512xf32, #tpu.memory_space<vmem>>, vector<8x512xf32>
    %229 = arith.truncf %219 : vector<8x128xf32> to vector<8x128xbf16>
    %cst_122 = arith.constant dense<0.000000e+00> : vector<8x512xf32>
    %230 = tpu.matmul %229, %0, %cst_122 {dimension_numbers = #tpu.dot_dimension_numbers<[1], [0], [0], [1], [0, 0, 1, 1], [], []>} : vector<8x128xbf16>, vector<128x512xbf16>, vector<8x512xf32> -> vector<8x512xf32>
    %231 = arith.addf %230, %228 : vector<8x512xf32>
    %232 = vector.extract_strided_slice %231 {offsets = [0, 0], sizes = [8, 128], strides = [1, 1]} : vector<8x512xf32> to vector<8x128xf32>
    %cst_123 = arith.constant 5.000000e-01 : f32
    %233 = vector.broadcast %cst_123 : f32 to vector<8x128xf32>
    %234 = arith.mulf %233, %232 : vector<8x128xf32>
    %235 = math.tanh %234 : vector<8x128xf32>
    %cst_124 = arith.constant 5.000000e-01 : f32
    %236 = vector.broadcast %cst_124 : f32 to vector<8x128xf32>
    %237 = arith.mulf %236, %235 : vector<8x128xf32>
    %cst_125 = arith.constant 5.000000e-01 : f32
    %238 = vector.broadcast %cst_125 : f32 to vector<8x128xf32>
    %239 = arith.addf %237, %238 : vector<8x128xf32>
    %240 = vector.extract_strided_slice %231 {offsets = [0, 128], sizes = [8, 128], strides = [1, 1]} : vector<8x512xf32> to vector<8x128xf32>
    %cst_126 = arith.constant 5.000000e-01 : f32
    %241 = vector.broadcast %cst_126 : f32 to vector<8x128xf32>
    %242 = arith.mulf %241, %240 : vector<8x128xf32>
    %243 = math.tanh %242 : vector<8x128xf32>
    %cst_127 = arith.constant 5.000000e-01 : f32
    %244 = vector.broadcast %cst_127 : f32 to vector<8x128xf32>
    %245 = arith.mulf %244, %243 : vector<8x128xf32>
    %cst_128 = arith.constant 5.000000e-01 : f32
    %246 = vector.broadcast %cst_128 : f32 to vector<8x128xf32>
    %247 = arith.addf %245, %246 : vector<8x128xf32>
    %248 = vector.extract_strided_slice %231 {offsets = [0, 256], sizes = [8, 128], strides = [1, 1]} : vector<8x512xf32> to vector<8x128xf32>
    %249 = math.tanh %248 : vector<8x128xf32>
    %250 = vector.extract_strided_slice %231 {offsets = [0, 384], sizes = [8, 128], strides = [1, 1]} : vector<8x512xf32> to vector<8x128xf32>
    %cst_129 = arith.constant 5.000000e-01 : f32
    %251 = vector.broadcast %cst_129 : f32 to vector<8x128xf32>
    %252 = arith.mulf %251, %250 : vector<8x128xf32>
    %253 = math.tanh %252 : vector<8x128xf32>
    %cst_130 = arith.constant 5.000000e-01 : f32
    %254 = vector.broadcast %cst_130 : f32 to vector<8x128xf32>
    %255 = arith.mulf %254, %253 : vector<8x128xf32>
    %cst_131 = arith.constant 5.000000e-01 : f32
    %256 = vector.broadcast %cst_131 : f32 to vector<8x128xf32>
    %257 = arith.addf %255, %256 : vector<8x128xf32>
    %258 = arith.mulf %247, %217 : vector<8x128xf32>
    %259 = arith.mulf %239, %249 : vector<8x128xf32>
    %260 = arith.addf %258, %259 : vector<8x128xf32>
    %261 = math.tanh %260 : vector<8x128xf32>
    %262 = arith.mulf %257, %261 : vector<8x128xf32>
    %c6 = arith.constant 6 : index
    %c0_132 = arith.constant 0 : index
    %263 = memref.load %arg0[%c6, %c0_132] : memref<8x2xi32, #tpu.memory_space<smem>>
    %264 = arith.index_cast %263 : i32 to index
    %c0_133 = arith.constant 0 : index
    %265 = vector.load %arg1[%264, %c0_133] : memref<50x512xf32, #tpu.memory_space<vmem>>, vector<1x512xf32>
    %c0_134 = arith.constant 0 : index
    %c0_135 = arith.constant 0 : index
    %266 = vector.load %arg8[%c0_134, %c0_135] : memref<8x512xf32, #tpu.memory_space<vmem>>, vector<1x512xf32>
    tpu.vector_store %arg8[%c0_134, %c0_135], %265 {strides = array<i32>} : memref<8x512xf32, #tpu.memory_space<vmem>>, vector<1x512xf32>,
    %c6_136 = arith.constant 6 : index
    %c1_137 = arith.constant 1 : index
    %267 = memref.load %arg0[%c6_136, %c1_137] : memref<8x2xi32, #tpu.memory_space<smem>>
    %268 = arith.index_cast %267 : i32 to index
    %c0_138 = arith.constant 0 : index
    %269 = vector.load %arg1[%268, %c0_138] : memref<50x512xf32, #tpu.memory_space<vmem>>, vector<1x512xf32>
    %c1_139 = arith.constant 1 : index
    %c0_140 = arith.constant 0 : index
    %270 = vector.load %arg8[%c1_139, %c0_140] : memref<8x512xf32, #tpu.memory_space<vmem>>, vector<1x512xf32>
    tpu.vector_store %arg8[%c1_139, %c0_140], %269 {strides = array<i32>} : memref<8x512xf32, #tpu.memory_space<vmem>>, vector<1x512xf32>,
    %c0_141 = arith.constant 0 : index
    %c0_142 = arith.constant 0 : index
    %271 = vector.load %arg8[%c0_141, %c0_142] : memref<8x512xf32, #tpu.memory_space<vmem>>, vector<8x512xf32>
    %272 = arith.truncf %262 : vector<8x128xf32> to vector<8x128xbf16>
    %cst_143 = arith.constant dense<0.000000e+00> : vector<8x512xf32>
    %273 = tpu.matmul %272, %0, %cst_143 {dimension_numbers = #tpu.dot_dimension_numbers<[1], [0], [0], [1], [0, 0, 1, 1], [], []>} : vector<8x128xbf16>, vector<128x512xbf16>, vector<8x512xf32> -> vector<8x512xf32>
    %274 = arith.addf %273, %271 : vector<8x512xf32>
    %275 = vector.extract_strided_slice %274 {offsets = [0, 0], sizes = [8, 128], strides = [1, 1]} : vector<8x512xf32> to vector<8x128xf32>
    %cst_144 = arith.constant 5.000000e-01 : f32
    %276 = vector.broadcast %cst_144 : f32 to vector<8x128xf32>
    %277 = arith.mulf %276, %275 : vector<8x128xf32>
    %278 = math.tanh %277 : vector<8x128xf32>
    %cst_145 = arith.constant 5.000000e-01 : f32
    %279 = vector.broadcast %cst_145 : f32 to vector<8x128xf32>
    %280 = arith.mulf %279, %278 : vector<8x128xf32>
    %cst_146 = arith.constant 5.000000e-01 : f32
    %281 = vector.broadcast %cst_146 : f32 to vector<8x128xf32>
    %282 = arith.addf %280, %281 : vector<8x128xf32>
    %283 = vector.extract_strided_slice %274 {offsets = [0, 128], sizes = [8, 128], strides = [1, 1]} : vector<8x512xf32> to vector<8x128xf32>
    %cst_147 = arith.constant 5.000000e-01 : f32
    %284 = vector.broadcast %cst_147 : f32 to vector<8x128xf32>
    %285 = arith.mulf %284, %283 : vector<8x128xf32>
    %286 = math.tanh %285 : vector<8x128xf32>
    %cst_148 = arith.constant 5.000000e-01 : f32
    %287 = vector.broadcast %cst_148 : f32 to vector<8x128xf32>
    %288 = arith.mulf %287, %286 : vector<8x128xf32>
    %cst_149 = arith.constant 5.000000e-01 : f32
    %289 = vector.broadcast %cst_149 : f32 to vector<8x128xf32>
    %290 = arith.addf %288, %289 : vector<8x128xf32>
    %291 = vector.extract_strided_slice %274 {offsets = [0, 256], sizes = [8, 128], strides = [1, 1]} : vector<8x512xf32> to vector<8x128xf32>
    %292 = math.tanh %291 : vector<8x128xf32>
    %293 = vector.extract_strided_slice %274 {offsets = [0, 384], sizes = [8, 128], strides = [1, 1]} : vector<8x512xf32> to vector<8x128xf32>
    %cst_150 = arith.constant 5.000000e-01 : f32
    %294 = vector.broadcast %cst_150 : f32 to vector<8x128xf32>
    %295 = arith.mulf %294, %293 : vector<8x128xf32>
    %296 = math.tanh %295 : vector<8x128xf32>
    %cst_151 = arith.constant 5.000000e-01 : f32
    %297 = vector.broadcast %cst_151 : f32 to vector<8x128xf32>
    %298 = arith.mulf %297, %296 : vector<8x128xf32>
    %cst_152 = arith.constant 5.000000e-01 : f32
    %299 = vector.broadcast %cst_152 : f32 to vector<8x128xf32>
    %300 = arith.addf %298, %299 : vector<8x128xf32>
    %301 = arith.mulf %290, %260 : vector<8x128xf32>
    %302 = arith.mulf %282, %292 : vector<8x128xf32>
    %303 = arith.addf %301, %302 : vector<8x128xf32>
    %304 = math.tanh %303 : vector<8x128xf32>
    %305 = arith.mulf %300, %304 : vector<8x128xf32>
    %c7 = arith.constant 7 : index
    %c0_153 = arith.constant 0 : index
    %306 = memref.load %arg0[%c7, %c0_153] : memref<8x2xi32, #tpu.memory_space<smem>>
    %307 = arith.index_cast %306 : i32 to index
    %c0_154 = arith.constant 0 : index
    %308 = vector.load %arg1[%307, %c0_154] : memref<50x512xf32, #tpu.memory_space<vmem>>, vector<1x512xf32>
    %c0_155 = arith.constant 0 : index
    %c0_156 = arith.constant 0 : index
    %309 = vector.load %arg8[%c0_155, %c0_156] : memref<8x512xf32, #tpu.memory_space<vmem>>, vector<1x512xf32>
    tpu.vector_store %arg8[%c0_155, %c0_156], %308 {strides = array<i32>} : memref<8x512xf32, #tpu.memory_space<vmem>>, vector<1x512xf32>,
    %c7_157 = arith.constant 7 : index
    %c1_158 = arith.constant 1 : index
    %310 = memref.load %arg0[%c7_157, %c1_158] : memref<8x2xi32, #tpu.memory_space<smem>>
    %311 = arith.index_cast %310 : i32 to index
    %c0_159 = arith.constant 0 : index
    %312 = vector.load %arg1[%311, %c0_159] : memref<50x512xf32, #tpu.memory_space<vmem>>, vector<1x512xf32>
    %c1_160 = arith.constant 1 : index
    %c0_161 = arith.constant 0 : index
    %313 = vector.load %arg8[%c1_160, %c0_161] : memref<8x512xf32, #tpu.memory_space<vmem>>, vector<1x512xf32>
    tpu.vector_store %arg8[%c1_160, %c0_161], %312 {strides = array<i32>} : memref<8x512xf32, #tpu.memory_space<vmem>>, vector<1x512xf32>,
    %c0_162 = arith.constant 0 : index
    %c0_163 = arith.constant 0 : index
    %314 = vector.load %arg8[%c0_162, %c0_163] : memref<8x512xf32, #tpu.memory_space<vmem>>, vector<8x512xf32>
    %315 = arith.truncf %305 : vector<8x128xf32> to vector<8x128xbf16>
    %cst_164 = arith.constant dense<0.000000e+00> : vector<8x512xf32>
    %316 = tpu.matmul %315, %0, %cst_164 {dimension_numbers = #tpu.dot_dimension_numbers<[1], [0], [0], [1], [0, 0, 1, 1], [], []>} : vector<8x128xbf16>, vector<128x512xbf16>, vector<8x512xf32> -> vector<8x512xf32>
    %317 = arith.addf %316, %314 : vector<8x512xf32>
    %318 = vector.extract_strided_slice %317 {offsets = [0, 0], sizes = [8, 128], strides = [1, 1]} : vector<8x512xf32> to vector<8x128xf32>
    %cst_165 = arith.constant 5.000000e-01 : f32
    %319 = vector.broadcast %cst_165 : f32 to vector<8x128xf32>
    %320 = arith.mulf %319, %318 : vector<8x128xf32>
    %321 = math.tanh %320 : vector<8x128xf32>
    %cst_166 = arith.constant 5.000000e-01 : f32
    %322 = vector.broadcast %cst_166 : f32 to vector<8x128xf32>
    %323 = arith.mulf %322, %321 : vector<8x128xf32>
    %cst_167 = arith.constant 5.000000e-01 : f32
    %324 = vector.broadcast %cst_167 : f32 to vector<8x128xf32>
    %325 = arith.addf %323, %324 : vector<8x128xf32>
    %326 = vector.extract_strided_slice %317 {offsets = [0, 128], sizes = [8, 128], strides = [1, 1]} : vector<8x512xf32> to vector<8x128xf32>
    %cst_168 = arith.constant 5.000000e-01 : f32
    %327 = vector.broadcast %cst_168 : f32 to vector<8x128xf32>
    %328 = arith.mulf %327, %326 : vector<8x128xf32>
    %329 = math.tanh %328 : vector<8x128xf32>
    %cst_169 = arith.constant 5.000000e-01 : f32
    %330 = vector.broadcast %cst_169 : f32 to vector<8x128xf32>
    %331 = arith.mulf %330, %329 : vector<8x128xf32>
    %cst_170 = arith.constant 5.000000e-01 : f32
    %332 = vector.broadcast %cst_170 : f32 to vector<8x128xf32>
    %333 = arith.addf %331, %332 : vector<8x128xf32>
    %334 = vector.extract_strided_slice %317 {offsets = [0, 256], sizes = [8, 128], strides = [1, 1]} : vector<8x512xf32> to vector<8x128xf32>
    %335 = math.tanh %334 : vector<8x128xf32>
    %336 = vector.extract_strided_slice %317 {offsets = [0, 384], sizes = [8, 128], strides = [1, 1]} : vector<8x512xf32> to vector<8x128xf32>
    %cst_171 = arith.constant 5.000000e-01 : f32
    %337 = vector.broadcast %cst_171 : f32 to vector<8x128xf32>
    %338 = arith.mulf %337, %336 : vector<8x128xf32>
    %339 = math.tanh %338 : vector<8x128xf32>
    %cst_172 = arith.constant 5.000000e-01 : f32
    %340 = vector.broadcast %cst_172 : f32 to vector<8x128xf32>
    %341 = arith.mulf %340, %339 : vector<8x128xf32>
    %cst_173 = arith.constant 5.000000e-01 : f32
    %342 = vector.broadcast %cst_173 : f32 to vector<8x128xf32>
    %343 = arith.addf %341, %342 : vector<8x128xf32>
    %344 = arith.mulf %333, %303 : vector<8x128xf32>
    %345 = arith.mulf %325, %335 : vector<8x128xf32>
    %346 = arith.addf %344, %345 : vector<8x128xf32>
    %347 = math.tanh %346 : vector<8x128xf32>
    %348 = arith.mulf %343, %347 : vector<8x128xf32>
    %349 = math.tanh %348 : vector<8x128xf32>
    %c0_174 = arith.constant 0 : index
    %c0_175 = arith.constant 0 : index
    %350 = vector.load %arg3[%c0_174, %c0_175] : memref<128x128xf32, #tpu.memory_space<vmem>>, vector<128x128xf32>
    %cst_176 = arith.constant dense<0.000000e+00> : vector<8x128xf32>
    %351 = tpu.matmul %349, %350, %cst_176 {dimension_numbers = #tpu.dot_dimension_numbers<[1], [0], [0], [1], [0, 0, 1, 1], [], []>} : vector<8x128xf32>, vector<128x128xf32>, vector<8x128xf32> -> vector<8x128xf32>
    %c0_177 = arith.constant 0 : index
    %c0_178 = arith.constant 0 : index
    %352 = vector.load %arg4[%c0_177, %c0_178] : memref<1x128xf32, #tpu.memory_space<vmem>>, vector<1x128xf32>
    %353 = vector.broadcast %352 : vector<1x128xf32> to vector<8x128xf32>
    %354 = arith.addf %351, %353 : vector<8x128xf32>
    %cst_179 = arith.constant 0.000000e+00 : f32
    %355 = vector.broadcast %cst_179 : f32 to vector<8x128xf32>
    %356 = arith.cmpf ogt, %354, %355 : vector<8x128xf32>
    %cst_180 = arith.constant 0.00999999977 : f32
    %357 = vector.broadcast %cst_180 : f32 to vector<8x128xf32>
    %358 = arith.mulf %357, %354 : vector<8x128xf32>
    %359 = arith.select %356, %354, %358 : vector<8x128xi1>, vector<8x128xf32>
    %c0_181 = arith.constant 0 : index
    %c0_182 = arith.constant 0 : index
    %360 = vector.load %arg5[%c0_181, %c0_182] : memref<128x128xf32, #tpu.memory_space<vmem>>, vector<128x128xf32>
    %cst_183 = arith.constant dense<0.000000e+00> : vector<8x128xf32>
    %361 = tpu.matmul %359, %360, %cst_183 {dimension_numbers = #tpu.dot_dimension_numbers<[1], [0], [0], [1], [0, 0, 1, 1], [], []>} : vector<8x128xf32>, vector<128x128xf32>, vector<8x128xf32> -> vector<8x128xf32>
    %c0_184 = arith.constant 0 : index
    %c0_185 = arith.constant 0 : index
    %362 = vector.load %arg6[%c0_184, %c0_185] : memref<1x128xf32, #tpu.memory_space<vmem>>, vector<1x128xf32>
    %363 = vector.broadcast %362 : vector<1x128xf32> to vector<8x128xf32>
    %364 = arith.addf %361, %363 : vector<8x128xf32>
    %c0_186 = arith.constant 0 : index
    %c0_187 = arith.constant 0 : index
    %365 = vector.load %arg7[%c0_186, %c0_187] : memref<8x128xf32, #tpu.memory_space<vmem>>, vector<8x128xf32>
    tpu.vector_store %arg7[%c0_186, %c0_187], %364 {strides = array<i32>} : memref<8x128xf32, #tpu.memory_space<vmem>>, vector<8x128xf32>,
    return
  }
}

</mosaic_0001>

<bundles_post_ra>
// kernel: tpu_custom_call.1
= control target key start
LH: loop header
LB: loop body
LE: loop exit
PB: predicated region body
PF: predicated region fallthrough
CT: control target
= control target key end

     0   :  { %12 = vsyncpa [#allocation6], 0  ;;  %s2652_s0 = inlined_call_operand.vmem [shape: s32[8,2], index: 0, kind: input, shape index: {}]   ;;  %s2653_s1 = inlined_call_operand.hbm [shape: f32[50,512], index: 1, kind: input, shape index: {}]   ;;  %s2654_s2 = inlined_call_operand.hbm [shape: bf16[128,512], index: 2, kind: input, shape index: {}]   ;;  %s2655_s3 = inlined_call_operand.hbm [shape: f32[128,128], index: 3, kind: input, shape index: {}]   ;;  %s2656_s4 = inlined_call_operand.vmem [shape: f32[1,128], index: 4, kind: input, shape index: {}]   ;;  %s2657_s5 = inlined_call_operand.hbm [shape: f32[128,128], index: 5, kind: input, shape index: {}]   ;;  %s2658_s6 = inlined_call_operand.vmem [shape: f32[1,128], index: 6, kind: input, shape index: {}]   ;;  %s2659_s7 = inlined_call_operand.hbm [shape: f32[8,128], index: 7, kind: output, shape index: {}]  }
   0x1   :  { %13 = vsyncpa [#allocation4], 0 }
   0x2   :  { %14 = vsyncpa [#allocation9], 0 }
   0x3   :  { %15 = vsyncpa [#allocation12], 0 }
   0x4   :  { %16 = vsyncpa [#allocation5], 0  ;;  %s2085_s24 = smov [#allocation8]   ;;  %s23_s28 = sshll.u32 %s2652_s0, 4  ;;  %s24_s28 = int_to_ptr.vmem [resolvable:$true] %s23_s28 }
   0x5   :  { %s44_s25 = sshll.u32 %s2085_s24, 4  ;;  %s45_s25 = int_to_ptr.vmem [resolvable:$true] %s44_s25 }
   0x6   :  { %s1971_s29 = scalar_lea.vmem %s45_s25, 4096  ;;  %p1976_p1 = scmp.lt.s32.totalorder %s45_s25, %s45_s25 }
   0x7   :  { %p1972_p0 = scmp.ne.s32.totalorder %s45_s25, %s1971_s29  ;;  %p1977_p2 = scmp.lt.s32.totalorder %s1971_s29, %s1971_s29 }
   0x9   :  { %p1978_p3 = por %p1977_p2, %p1976_p1 }
   0xb   :  { %p1979_p4 = pnand %p1978_p3, %p1972_p0 }
   0xd   :  { %1982 = shalt.err (!%p1979_p4)
}
   0xe   :  { %s2086_s30 = smov 256   ;;  %s2087_s8 = smov 16  }
   0xf   :  { %50 = dma.hbm_to_vmem [thread:$0]  %s2654_s2, 4096, %s45_s25, [#allocation9], %s2086_s30, %s2086_s30, %s2087_s8  }
  0x10   :  { %s1983_s11 = scalar_lea.vmem %s24_s28, 128  ;;  %p1988_p6 = scmp.lt.s32.totalorder %s24_s28, %s24_s28 }
  0x11   :  { %p1984_p5 = scmp.ne.s32.totalorder %s24_s28, %s1983_s11  ;;  %p1989_p7 = scmp.lt.s32.totalorder %s1983_s11, %s1983_s11 }
  0x13   :  { %p1990_p8 = por %p1989_p7, %p1988_p6 }
  0x15   :  { %p1991_p9 = pnand %p1990_p8, %p1984_p5 }
  0x17   :  { %1994 = shalt.err (!%p1991_p9)
}
  0x18   :  { %s2088_s0 = smov [#allocation3]   ;;  %s2089_s12 = smov [#allocation7]  }
  0x19   :  { %26 = dma.vmem_to_smem %s24_s28, 128, %s2088_s0, [#allocation6]  }
  0x1a   :  { %s32_s13 = sshll.u32 %s2089_s12, 4  ;;  %s33_s13 = int_to_ptr.vmem [resolvable:$true] %s32_s13 }
  0x1b   :  { %s2003_s14 = scalar_lea.vmem %s33_s13, 3584  ;;  %p2008_p11 = scmp.lt.s32.totalorder %s33_s13, %s33_s13 }
  0x1c   :  { %p2004_p10 = scmp.ne.s32.totalorder %s33_s13, %s2003_s14  ;;  %p2009_p12 = scmp.lt.s32.totalorder %s2003_s14, %s2003_s14 }
  0x1e   :  { %p2010_p13 = por %p2009_p12, %p2008_p11 }
  0x20   :  { %p2011_p0 = pnand %p2010_p13, %p2004_p10 }
  0x22   :  { %2014 = shalt.err (!%p2011_p0)
}
  0x23   :  { %s2090_s2 = smov 512   ;;  %s2091_s15 = smov 32  }
  0x24   :  { %38 = dma.hbm_to_vmem [thread:$0]  %s2653_s1, 3584, %s33_s13, [#allocation4], %s2090_s2, %s2090_s2, %s2091_s15  }
  0x25   :  { %s2092_s18 = smov [#allocation10]  }
  0x26   :  { %s56_s19 = sshll.u32 %s2092_s18, 4  ;;  %s57_s19 = int_to_ptr.vmem [resolvable:$true] %s56_s19 }
  0x27   :  { %s2023_s20 = scalar_lea.vmem %s57_s19, 2048  ;;  %p2028_p2 = scmp.lt.s32.totalorder %s57_s19, %s57_s19 }
  0x28   :  { %p2024_p1 = scmp.ne.s32.totalorder %s57_s19, %s2023_s20  ;;  %p2029_p3 = scmp.lt.s32.totalorder %s2023_s20, %s2023_s20 }
  0x2a   :  { %p2030_p4 = por %p2029_p3, %p2028_p2 }
  0x2c   :  { %p2031_p5 = pnand %p2030_p4, %p2024_p1 }
  0x2e   :  { %2034 = shalt.err (!%p2031_p5)
}
  0x2f   :  { %s2093_s21 = smov 128   ;;  %s2094_s22 = smov 8  }
  0x30   :  { %62 = dma.hbm_to_vmem [thread:$0]  %s2655_s3, 2048, %s57_s19, [#allocation9], %s2093_s21, %s2093_s21, %s2094_s22  }
  0x31   :  { %s2095_s25 = smov [#allocation11]  }
  0x32   :  { %s70_s26 = sshll.u32 %s2095_s25, 4  ;;  %s71_s26 = int_to_ptr.vmem [resolvable:$true] %s70_s26 }
  0x33   :  { %s2043_s1 = scalar_lea.vmem %s71_s26, 2048  ;;  %p2048_p7 = scmp.lt.s32.totalorder %s71_s26, %s71_s26 }
  0x34   :  { %p2044_p6 = scmp.ne.s32.totalorder %s71_s26, %s2043_s1  ;;  %p2049_p8 = scmp.lt.s32.totalorder %s2043_s1, %s2043_s1 }
  0x36   :  { %p2050_p9 = por %p2049_p8, %p2048_p7 }
  0x38   :  { %p2051_p10 = pnand %p2050_p9, %p2044_p6 }
  0x3a   :  { %2054 = shalt.err (!%p2051_p10)
}
  0x3b   :  { %76 = dma.hbm_to_vmem [thread:$0]  %s2657_s5, 2048, %s71_s26, [#allocation12], %s2093_s21, %s2093_s21, %s2094_s22  }
  0x3c   :  { %2075 = dma.done.wait [#allocation6], 128  }
  0x3d   :  { %2076 = vsyncadd [#allocation6], 4294967168 }
  0x3e   :  { %2077 = dma.done.wait [#allocation4], 3584  }
  0x3f   :  { %2078 = vsyncadd [#allocation4], 4294963712 }
  0x40   :  { %2079 = dma.done.wait [#allocation9], 6144  }
  0x41   :  { %2080 = vsyncadd [#allocation9], 4294961152 }
  0x42   :  { %2081 = dma.done.wait [#allocation12], 2048  }
  0x43   :  { %2082 = vsyncadd [#allocation12], 4294965248 }
  0x44   :  { %94 = sfence }
  0x45   :  { %v2155_v0 = vld [vmem:[#allocation8 + $0xe4] ss:$16 sps:$4 sm:$0xff]   ;;  %v2157_v1 = vld [vmem:[#allocation8 + $0xe0] ss:$16 sps:$4 sm:$0xff]   ;;  %v2096_v2 = vmov 0   ;;  %v2097_v3 = vmov 0.0   ;;  %v142_v21 = vlaneseq }
  0x46   :  { %357 = vmatprep.mubr.bf16.mxu0 %v2096_v2  ;;  %398 = vmatprep.mubr.bf16.mxu1 %v2096_v2  ;;  %128 = vst [vmem:[#allocation2] sm:$0xff] %v2097_v3  ;;  %129 = vst [vmem:[#allocation2 + $0x8] sm:$0xff] %v2097_v3  ;;  %s2165_s3 = sld [smem:[#allocation3]]  ;;  %v2168_v4 = vld [vmem:[#allocation8 + $0xec] ss:$16 sps:$4 sm:$0xff]   ;;  %vm2098_vm1 = vmmov 0  }
  0x47   :  { %130 = vst [vmem:[#allocation2 + $0x10] sm:$0xff] %v2097_v3  ;;  %131 = vst [vmem:[#allocation2 + $0x18] sm:$0xff] %v2097_v3  ;;  %325 = vmatprep.subr.bf16.mxu0 %v2155_v0  ;;  %v2170_v5 = vld [vmem:[#allocation8 + $0xe8] ss:$16 sps:$4 sm:$0xff]   ;;  %v2173_v6 = vld [vmem:[#allocation8 + $0xc4] ss:$16 sps:$4 sm:$0xff]   ;;  %366 = vmatprep.subr.bf16.mxu1 %v2168_v4 }
  0x48   :  { %326 = vmatpush1.bf16.msra.mxu0 %v2157_v1  ;;  %v2175_v7 = vld [vmem:[#allocation8 + $0xc0] ss:$16 sps:$4 sm:$0xff]   ;;  %v2178_v8 = vld [vmem:[#allocation8 + $0xcc] ss:$16 sps:$4 sm:$0xff]   ;;  %s2180_s5 = sld [smem:[#allocation3 + $0x1]]  ;;  %367 = vmatpush1.bf16.msra.mxu1 %v2170_v5  ;;  %vm2234_vm0 = vcmp.lt.s32.totalorder %v142_v21, 512 }
  0x49   :  { %327 = vmatprep.subr.bf16.mxu0 %v2173_v6  ;;  %v2184_v9 = vld [vmem:[#allocation8 + $0xc8] ss:$16 sps:$4 sm:$0xff]   ;;  %368 = vmatprep.subr.bf16.mxu1 %v2178_v8  ;;  %v2187_v10 = vld [vmem:[#allocation8 + $0xa4] ss:$16 sps:$4 sm:$0xff]   ;;  %v2190_v11 = vld [vmem:[#allocation8 + $0xa0] ss:$16 sps:$4 sm:$0xff]  }
  0x4a   :  { %v2192_v12 = vld [vmem:[#allocation8 + $0xac] ss:$16 sps:$4 sm:$0xff]   ;;  %v2195_v13 = vld [vmem:[#allocation8 + $0x84] ss:$16 sps:$4 sm:$0xff]   ;;  %v2198_v14 = vld [vmem:[#allocation8 + $0xa8] ss:$16 sps:$4 sm:$0xff]  }
  0x4b   :  { %v2202_v15 = vld [vmem:[#allocation8 + $0x8c] ss:$16 sps:$4 sm:$0xff]   ;;  %v2205_v16 = vld [vmem:[#allocation8 + $0x80] ss:$16 sps:$4 sm:$0xff]   ;;  %v2209_v17 = vld [vmem:[#allocation8 + $0x64] ss:$16 sps:$4 sm:$0xff]  }
  0x4c   :  { %328 = vmatpush1.bf16.msra.mxu0 %v2175_v7  ;;  %369 = vmatpush1.bf16.msra.mxu1 %v2184_v9  ;;  %s133_s29 = sshra.s32 %s2165_s3, 3  ;;  %s136_s8 = sand.u32 7, %s2165_s3  ;;  %v2213_v18 = vld [vmem:[#allocation8 + $0x88] ss:$16 sps:$4 sm:$0xff]   ;;  %v2217_v19 = vld [vmem:[#allocation8 + $0x6c] ss:$16 sps:$4 sm:$0xff]  }
  0x4d   :  { %329 = vmatprep.subr.bf16.mxu0 %v2187_v10  ;;  %370 = vmatprep.subr.bf16.mxu1 %v2192_v12  ;;  %s1666_s9 = sshll.u32 %s133_s29, 5  ;;  %v2220_v20 = vld [vmem:[#allocation8 + $0x60] ss:$16 sps:$4 sm:$0xff]   ;;  %v2223_v22 = vld [vmem:[#allocation8 + $0x44] ss:$16 sps:$4 sm:$0xff]   ;;  %s1622_s2 = sld [smem:[#allocation3 + $0x80]] }
  0x4e   :  { %s149_s30 = sshra.s32 %s2180_s5, 3  ;;  %s152_s10 = sand.u32 7, %s2180_s5  ;;  %v2226_v23 = vld [vmem:[#allocation8 + $0x68] ss:$16 sps:$4 sm:$0xff]   ;;  %v2229_v24 = vld [vmem:[#allocation8 + $0x4c] ss:$16 sps:$4 sm:$0xff]  }
  0x4f   :  { %s1667_s11 = sshll.u32 %s149_s30, 5  ;;  %s139_s0 = sadd.s32 %s1666_s9, %s136_s8  ;;  %v2232_v25 = vld [vmem:[#allocation8 + $0x40] ss:$16 sps:$4 sm:$0xff]   ;;  %v2239_v27 = vld [vmem:[#allocation8 + $0x24] ss:$16 sps:$4 sm:$0xff]  }
  0x50   :  { %330 = vmatpush1.bf16.msra.mxu0 %v2190_v11  ;;  %371 = vmatpush1.bf16.msra.mxu1 %v2198_v14  ;;  %s155_s12 = sadd.s32 %s1667_s11, %s152_s10  ;;  %v2242_v28 = vld [vmem:[#allocation8 + $0x48] ss:$16 sps:$4 sm:$0xff]   ;;  %s140_s13 = scalar_lea.vmem [#allocation7], %s139_s0  ;;  %v2245_v30 = vld [vmem:[#allocation8 + $0x2c] ss:$16 sps:$4 sm:$0xff]  }
  0x51   :  { %331 = vmatprep.subr.bf16.mxu0 %v2195_v13  ;;  %372 = vmatprep.subr.bf16.mxu1 %v2202_v15  ;;  %v141_v29 = vld [vmem:[%s140_s13] ss:$8 sm:$0xf]  ;;  %s156_s14 = scalar_lea.vmem [#allocation7], %s155_s12  ;;  %v2255_v33 = vld [vmem:[#allocation8 + $0x4] ss:$16 sps:$4 sm:$0xff]  }
  0x52   :  { %146 = vst.msk [vmem:[#allocation2] ss:$8 sm:$0xf] %vm2234_vm0, %v141_v29  ;;  %v157_v31 = vld [vmem:[%s156_s14] ss:$8 sm:$0xf] }
  0x53   :  { %v2250_v32 = vld [vmem:[#allocation8 + $0x20] ss:$16 sps:$4 sm:$0xff]   ;;  %159 = vst.msk [vmem:[#allocation2 + $0x1] ss:$8 sm:$0xf] %vm2234_vm0, %v157_v31  ;;  %s1625_s15 = sld [smem:[#allocation3 + $0x81]] }
  0x54   :  { %332 = vmatpush1.bf16.msra.mxu0 %v2205_v16  ;;  %373 = vmatpush1.bf16.msra.mxu1 %v2213_v18  ;;  %v2258_v34 = vld [vmem:[#allocation8 + $0x28] ss:$16 sps:$4 sm:$0xff]   ;;  %v2261_v35 = vld [vmem:[#allocation8 + $0xc] ss:$16 sps:$4 sm:$0xff]   ;;  %v2264_v36 = vld [vmem:[#allocation8] ss:$16 sps:$4 sm:$0xff]  }
  0x55   :  { %333 = vmatprep.subr.bf16.mxu0 %v2209_v17  ;;  %374 = vmatprep.subr.bf16.mxu1 %v2217_v19  ;;  %v2268_v37 = vld [vmem:[#allocation8 + $0x8] ss:$16 sps:$4 sm:$0xff]   ;;  %s426_s16 = sshra.s32 %s1622_s2, 3  ;;  %s429_s17 = sand.u32 7, %s1622_s2 }
  0x56   :  { %s1668_s18 = sshll.u32 %s426_s16, 5  ;;  %s1628_s26 = sld [smem:[#allocation3 + $0x100]] }
  0x57   :  { %s432_s20 = sadd.s32 %s1668_s18, %s429_s17  ;;  %s1631_s1 = sld [smem:[#allocation3 + $0x101]] }
  0x58   :  { %334 = vmatpush1.bf16.msra.mxu0 %v2220_v20  ;;  %375 = vmatpush1.bf16.msra.mxu1 %v2226_v23  ;;  %s433_s23 = scalar_lea.vmem [#allocation7], %s432_s20  ;;  %s1634_s0 = sld [smem:[#allocation3 + $0x180]] }
  0x59   :  { %335 = vmatprep.subr.bf16.mxu0 %v2223_v22  ;;  %376 = vmatprep.subr.bf16.mxu1 %v2229_v24  ;;  %s438_s19 = sshra.s32 %s1625_s15, 3  ;;  %s441_s21 = sand.u32 7, %s1625_s15  ;;  %v434_v42 = vld [vmem:[%s433_s23] ss:$8 sm:$0xf] }
  0x5a   :  { %v161_v38 = vld [vmem:[#allocation2] sm:$0xff]  ;;  %v162_v39 = vld [vmem:[#allocation2 + $0x8] sm:$0xff]  ;;  %s1669_s22 = sshll.u32 %s438_s19, 5  ;;  %v163_v40 = vld [vmem:[#allocation2 + $0x10] sm:$0xff]  ;;  %s1637_s12 = sld [smem:[#allocation3 + $0x181]] }
  0x5b   :  { %v164_v41 = vld [vmem:[#allocation2 + $0x18] sm:$0xff]  ;;  %s444_s24 = sadd.s32 %s1669_s22, %s441_s21  ;;  %s1640_s22 = sld [smem:[#allocation3 + $0x200]] }
  0x5c   :  { %336 = vmatpush1.bf16.msra.mxu0 %v2232_v25  ;;  %377 = vmatpush1.bf16.msra.mxu1 %v2242_v28  ;;  %435 = vst.msk [vmem:[#allocation2] ss:$8 sm:$0xf] %vm2234_vm0, %v434_v42  ;;  %s445_s25 = scalar_lea.vmem [#allocation7], %s444_s24  ;;  %s555_s27 = sshra.s32 %s1628_s26, 3 }
  0x5d   :  { %337 = vmatprep.subr.bf16.mxu0 %v2239_v27  ;;  %378 = vmatprep.subr.bf16.mxu1 %v2245_v30  ;;  %v446_v43 = vld [vmem:[%s445_s25] ss:$8 sm:$0xf]  ;;  %s558_s28 = sand.u32 7, %s1628_s26  ;;  %s1670_s3 = sshll.u32 %s555_s27, 5 }
  0x5e   :  { %447 = vst.msk [vmem:[#allocation2 + $0x1] ss:$8 sm:$0xf] %vm2234_vm0, %v446_v43  ;;  %s567_s5 = sshra.s32 %s1631_s1, 3  ;;  %s561_s29 = sadd.s32 %s1670_s3, %s558_s28 }
  0x5f   :  { %s570_s30 = sand.u32 7, %s1631_s1  ;;  %s1671_s8 = sshll.u32 %s567_s5, 5 }
  0x60   :  { %338 = vmatpush1.bf16.msra.mxu0 %v2250_v32  ;;  %379 = vmatpush1.bf16.msra.mxu1 %v2258_v34  ;;  %s562_s9 = scalar_lea.vmem [#allocation7], %s561_s29  ;;  %s573_s10 = sadd.s32 %s1671_s8, %s570_s30 }
  0x61   :  { %339 = vmatprep.subr.bf16.mxu0 %v2255_v33  ;;  %380 = vmatprep.subr.bf16.mxu1 %v2261_v35  ;;  %s574_s11 = scalar_lea.vmem [#allocation7], %s573_s10  ;;  %s684_s13 = sshra.s32 %s1634_s0, 3 }
  0x62   :  { %s687_s14 = sand.u32 7, %s1634_s0  ;;  %s1672_s2 = sshll.u32 %s684_s13, 5 }
  0x63   :  { %s696_s15 = sshra.s32 %s1637_s12, 3  ;;  %s690_s16 = sadd.s32 %s1672_s2, %s687_s14 }
  0x64   :  { %340 = vmatpush1.bf16.msra.mxu0 %v2264_v36  ;;  %381 = vmatpush1.bf16.msra.mxu1 %v2268_v37  ;;  %s699_s17 = sand.u32 7, %s1637_s12  ;;  %s1673_s18 = sshll.u32 %s696_s15, 5 }
  0x65   :  { %454 = vmatprep.subr.bf16.mxu0 %v2155_v0  ;;  %495 = vmatprep.subr.bf16.mxu1 %v2168_v4  ;;  %s691_s19 = scalar_lea.vmem [#allocation7], %s690_s16  ;;  %s702_s20 = sadd.s32 %s1673_s18, %s699_s17 }
  0x66   :  { %s703_s21 = scalar_lea.vmem [#allocation7], %s702_s20  ;;  %s1643_s23 = sld [smem:[#allocation3 + $0x201]] }
  0x67   :  { %358 = vmatmul.mubr.bf16.vlgmr.msra.gmra.mxu0 %v2096_v2  ;;  %399 = vmatmul.mubr.bf16.vlgmr.msra.gmra.mxu1 %v2096_v2  ;;  %s813_s24 = sshra.s32 %s1640_s22, 3  ;;  %s816_s25 = sand.u32 7, %s1640_s22 }
  0x68   :  { %455 = vmatpush1.bf16.msra.mxu0 %v2157_v1  ;;  %486 = vmatprep.mubr.bf16.mxu0 %v2096_v2  ;;  %s1674_s26 = sshll.u32 %s813_s24, 5  ;;  %s1646_s8 = sld [smem:[#allocation3 + $0x280]] }
  0x69   :  { %456 = vmatprep.subr.bf16.mxu0 %v2173_v6  ;;  %496 = vmatpush1.bf16.msra.mxu1 %v2170_v5  ;;  %s819_s27 = sadd.s32 %s1674_s26, %s816_s25  ;;  %s1652_s18 = sld [smem:[#allocation3 + $0x300]] }
  0x6a   :  { %527 = vmatprep.mubr.bf16.mxu1 %v2096_v2  ;;  %497 = vmatprep.subr.bf16.mxu1 %v2178_v8  ;;  %s820_s5 = scalar_lea.vmem [#allocation7], %s819_s27 }
  0x6c   :  { %457 = vmatpush1.bf16.msra.mxu0 %v2175_v7  ;;  %s825_s1 = sshra.s32 %s1643_s23, 3  ;;  %s828_s28 = sand.u32 7, %s1643_s23 }
  0x6d   :  { %458 = vmatprep.subr.bf16.mxu0 %v2187_v10  ;;  %498 = vmatpush1.bf16.msra.mxu1 %v2184_v9  ;;  %s1675_s3 = sshll.u32 %s825_s1, 5 }
  0x6e   :  { %499 = vmatprep.subr.bf16.mxu1 %v2192_v12  ;;  %s831_s29 = sadd.s32 %s1675_s3, %s828_s28  ;;  %s942_s10 = sshra.s32 %s1646_s8, 3 }
  0x6f   :  { %s832_s30 = scalar_lea.vmem [#allocation7], %s831_s29  ;;  %s1676_s0 = sshll.u32 %s942_s10, 5 }
  0x70   :  { %459 = vmatpush1.bf16.msra.mxu0 %v2190_v11  ;;  %s1071_s20 = sshra.s32 %s1652_s18, 3  ;;  %s1658_s3 = sld [smem:[#allocation3 + $0x380]] }
  0x71   :  { %460 = vmatprep.subr.bf16.mxu0 %v2195_v13  ;;  %500 = vmatpush1.bf16.msra.mxu1 %v2198_v14  ;;  %s1678_s22 = sshll.u32 %s1071_s20, 5 }
  0x72   :  { %501 = vmatprep.subr.bf16.mxu1 %v2202_v15 }
  0x74   :  { %461 = vmatpush1.bf16.msra.mxu0 %v2205_v16 }
  0x75   :  { %462 = vmatprep.subr.bf16.mxu0 %v2209_v17  ;;  %502 = vmatpush1.bf16.msra.mxu1 %v2213_v18 }
  0x76   :  { %503 = vmatprep.subr.bf16.mxu1 %v2217_v19  ;;  %s1200_s29 = sshra.s32 %s1658_s3, 3 }
  0x78   :  { %463 = vmatpush1.bf16.msra.mxu0 %v2220_v20 }
  0x79   :  { %464 = vmatprep.subr.bf16.mxu0 %v2223_v22  ;;  %504 = vmatpush1.bf16.msra.mxu1 %v2226_v23 }
  0x7a   :  { %505 = vmatprep.subr.bf16.mxu1 %v2229_v24 }
  0x7c   :  { %465 = vmatpush1.bf16.msra.mxu0 %v2232_v25 }
  0x7d   :  { %466 = vmatprep.subr.bf16.mxu0 %v2239_v27  ;;  %506 = vmatpush1.bf16.msra.mxu1 %v2242_v28 }
  0x7e   :  { %507 = vmatprep.subr.bf16.mxu1 %v2245_v30 }
  0x80   :  { %467 = vmatpush1.bf16.msra.mxu0 %v2250_v32 }
  0x81   :  { %468 = vmatprep.subr.bf16.mxu0 %v2255_v33  ;;  %508 = vmatpush1.bf16.msra.mxu1 %v2258_v34 }
  0x82   :  { %509 = vmatprep.subr.bf16.mxu1 %v2261_v35 }
  0x84   :  { %469 = vmatpush1.bf16.msra.mxu0 %v2264_v36 }
  0x85   :  { %583 = vmatprep.subr.bf16.mxu0 %v2155_v0  ;;  %510 = vmatpush1.bf16.msra.mxu1 %v2268_v37 }
  0x86   :  { %624 = vmatprep.subr.bf16.mxu1 %v2168_v4 }
 0x127   :  { %v359_v44 = vpop.f32.mrf.mxu0  ;;  %v400_v47 = vpop.f32.mrf.mxu1 }
 0x128   :  { %v360_v45 = vadd.f32 %v359_v44, %v161_v38  ;;  %v401_v53 = vadd.f32 %v400_v47, %v163_v40  ;;  %v451_v47 = vld [vmem:[#allocation2 + $0x10] sm:$0xff] }
 0x129   :  { %v361_v46 = vpop.f32.mrf.mxu0  ;;  %v402_v51 = vpop.f32.mrf.mxu1 }
 0x12a   :  { %v407_v48 = vmul.f32 0.5, %v360_v45  ;;  %v362_v49 = vadd.f32 %v361_v46, %v162_v39  ;;  %v403_v57 = vadd.f32 %v402_v51, %v164_v41  ;;  %v449_v46 = vld [vmem:[#allocation2] sm:$0xff] }
 0x12b   :  { %v363_v50 = vpop.f32.mrf.mxu0  ;;  %v404_v55 = vpop.f32.mrf.mxu1  ;;  %v575_v51 = vld [vmem:[%s574_s11] ss:$8 sm:$0xf]  ;;  %s945_s11 = sand.u32 7, %s1646_s8  ;;  %s1680_s8 = sshll.u32 %s1200_s29, 5 }
 0x12c   :  { %1849 = vtanh.f32 %v407_v48  ;;  %v411_v52 = vmul.f32 0.5, %v362_v49  ;;  %v416_v58 = vmul.f32 0.5, %v403_v57  ;;  %v450_v48 = vld [vmem:[#allocation2 + $0x8] sm:$0xff]  ;;  %v452_v49 = vld [vmem:[#allocation2 + $0x18] sm:$0xff]  ;;  %s948_s13 = sadd.s32 %s1676_s0, %s945_s11 }
 0x12d   :  { %v364_v54 = vpop.f32.mrf.mxu0  ;;  %v405_v56 = vpop.f32.mrf.mxu1  ;;  %v563_v50 = vld [vmem:[%s562_s9] ss:$8 sm:$0xf]  ;;  %576 = vst.msk [vmem:[#allocation2 + $0x1] ss:$8 sm:$0xf] %vm2234_vm0, %v575_v51 }
 0x12e   :  { %1851 = vtanh.f32 %v411_v52  ;;  %564 = vst.msk [vmem:[#allocation2] ss:$8 sm:$0xf] %vm2234_vm0, %v563_v50  ;;  %s1649_s9 = sld [smem:[#allocation3 + $0x281]]  ;;  %s949_s15 = scalar_lea.vmem [#allocation7], %s948_s13 }
 0x12f   :  { %1853 = vtanh.f32 %v401_v53 }
 0x130   :  { %1855 = vtanh.f32 %v416_v58 }
 0x134   :  { %s954_s12 = sshra.s32 %s1649_s9, 3  ;;  %s957_s14 = sand.u32 7, %s1649_s9 }
 0x135   :  { %s1677_s2 = sshll.u32 %s954_s12, 5 }
 0x136   :  { %s960_s16 = sadd.s32 %s1677_s2, %s957_s14 }
 0x137   :  { %s961_s17 = scalar_lea.vmem [#allocation7], %s960_s16 }
 0x139   :  { %v1850_v59 = vpop.eup %1849 }
 0x13a   :  { %v409_v60 = vmul.f32 0.5, %v1850_v59 }
 0x13b   :  { %v1852_v61 = vpop.eup %1851 }
 0x13c   :  { %v410_v62 = vadd.f32 0.5, %v409_v60  ;;  %v413_v63 = vmul.f32 0.5, %v1852_v61  ;;  %v1854_v21 = vpop.eup %1853 }
 0x13d   :  { %v1856_v40 = vpop.eup %1855 }
 0x13e   :  { %v414_v29 = vadd.f32 0.5, %v413_v63  ;;  %v421_v38 = vmul.f32 %v1854_v21, %v410_v62  ;;  %v418_v42 = vmul.f32 0.5, %v1856_v40 }
 0x140   :  { %v420_v31 = vmul.f32 0.0, %v414_v29  ;;  %v419_v43 = vadd.f32 0.5, %v418_v42 }
 0x142   :  { %v2315_v39 = vadd.f32 %v421_v38, %v420_v31 }
 0x144   :  { %1857 = vtanh.f32 %v2315_v39 }
 0x151   :  { %v1858_v44 = vpop.eup %1857 }
 0x152   :  { %v424_v41 = vmul.f32 %v1858_v44, %v419_v43 }
 0x154   :  { %v453_v45 = vpack.c.bf16 %v424_v41, %v424_v41 }
 0x156   :  { %487 = vmatmul.mubr.bf16.vlgmr.msra.gmra.mxu0 %v453_v45  ;;  %528 = vmatmul.mubr.bf16.vlgmr.msra.gmra.mxu1 %v453_v45 }
 0x157   :  { %584 = vmatpush1.bf16.msra.mxu0 %v2157_v1  ;;  %625 = vmatpush1.bf16.msra.mxu1 %v2170_v5 }
 0x158   :  { %585 = vmatprep.subr.bf16.mxu0 %v2173_v6  ;;  %626 = vmatprep.subr.bf16.mxu1 %v2178_v8 }
 0x159   :  { %615 = vmatprep.mubr.bf16.mxu0 %v2096_v2  ;;  %656 = vmatprep.mubr.bf16.mxu1 %v2096_v2 }
 0x15b   :  { %586 = vmatpush1.bf16.msra.mxu0 %v2175_v7  ;;  %627 = vmatpush1.bf16.msra.mxu1 %v2184_v9 }
 0x15c   :  { %587 = vmatprep.subr.bf16.mxu0 %v2187_v10  ;;  %628 = vmatprep.subr.bf16.mxu1 %v2192_v12 }
 0x15f   :  { %588 = vmatpush1.bf16.msra.mxu0 %v2190_v11  ;;  %629 = vmatpush1.bf16.msra.mxu1 %v2198_v14 }
 0x160   :  { %589 = vmatprep.subr.bf16.mxu0 %v2195_v13  ;;  %630 = vmatprep.subr.bf16.mxu1 %v2202_v15 }
 0x163   :  { %590 = vmatpush1.bf16.msra.mxu0 %v2205_v16  ;;  %631 = vmatpush1.bf16.msra.mxu1 %v2213_v18 }
 0x164   :  { %591 = vmatprep.subr.bf16.mxu0 %v2209_v17  ;;  %632 = vmatprep.subr.bf16.mxu1 %v2217_v19 }
 0x167   :  { %592 = vmatpush1.bf16.msra.mxu0 %v2220_v20  ;;  %633 = vmatpush1.bf16.msra.mxu1 %v2226_v23 }
 0x168   :  { %593 = vmatprep.subr.bf16.mxu0 %v2223_v22  ;;  %634 = vmatprep.subr.bf16.mxu1 %v2229_v24 }
 0x16b   :  { %594 = vmatpush1.bf16.msra.mxu0 %v2232_v25  ;;  %635 = vmatpush1.bf16.msra.mxu1 %v2242_v28 }
 0x16c   :  { %595 = vmatprep.subr.bf16.mxu0 %v2239_v27  ;;  %636 = vmatprep.subr.bf16.mxu1 %v2245_v30 }
 0x16f   :  { %596 = vmatpush1.bf16.msra.mxu0 %v2250_v32  ;;  %637 = vmatpush1.bf16.msra.mxu1 %v2258_v34 }
 0x170   :  { %597 = vmatprep.subr.bf16.mxu0 %v2255_v33  ;;  %638 = vmatprep.subr.bf16.mxu1 %v2261_v35 }
 0x173   :  { %598 = vmatpush1.bf16.msra.mxu0 %v2264_v36  ;;  %639 = vmatpush1.bf16.msra.mxu1 %v2268_v37 }
 0x174   :  { %712 = vmatprep.subr.bf16.mxu0 %v2155_v0  ;;  %753 = vmatprep.subr.bf16.mxu1 %v2168_v4 }
 0x216   :  { %v488_v52 = vpop.f32.mrf.mxu0  ;;  %v529_v53 = vpop.f32.mrf.mxu1 }
 0x217   :  { %v489_v54 = vadd.f32 %v488_v52, %v449_v46  ;;  %v530_v21 = vadd.f32 %v529_v53, %v451_v47 }
 0x218   :  { %v490_v55 = vpop.f32.mrf.mxu0  ;;  %v531_v56 = vpop.f32.mrf.mxu1 }
 0x219   :  { %v536_v57 = vmul.f32 0.5, %v489_v54  ;;  %v491_v58 = vadd.f32 %v490_v55, %v450_v48  ;;  %v532_v29 = vadd.f32 %v531_v56, %v452_v49  ;;  %v580_v55 = vld [vmem:[#allocation2 + $0x10] sm:$0xff]  ;;  %v579_v56 = vld [vmem:[#allocation2 + $0x8] sm:$0xff] }
 0x21a   :  { %v492_v59 = vpop.f32.mrf.mxu0  ;;  %v533_v60 = vpop.f32.mrf.mxu1 }
 0x21b   :  { %1859 = vtanh.f32 %v536_v57  ;;  %v540_v61 = vmul.f32 0.5, %v491_v58  ;;  %v545_v31 = vmul.f32 0.5, %v532_v29  ;;  %v581_v57 = vld [vmem:[#allocation2 + $0x18] sm:$0xff] }
 0x21c   :  { %v493_v62 = vpop.f32.mrf.mxu0  ;;  %v534_v63 = vpop.f32.mrf.mxu1  ;;  %v692_v58 = vld [vmem:[%s691_s19] ss:$8 sm:$0xf]  ;;  %s1655_s19 = sld [smem:[#allocation3 + $0x301]] }
 0x21d   :  { %1861 = vtanh.f32 %v540_v61  ;;  %v704_v59 = vld [vmem:[%s703_s21] ss:$8 sm:$0xf]  ;;  %s1074_s21 = sand.u32 7, %s1652_s18  ;;  %s2099_s18 = smov [#allocation13]  }
 0x21e   :  { %1863 = vtanh.f32 %v530_v21  ;;  %s1077_s24 = sadd.s32 %s1678_s22, %s1074_s21 }
 0x21f   :  { %1865 = vtanh.f32 %v545_v31  ;;  %s1078_s1 = scalar_lea.vmem [#allocation7], %s1077_s24 }
 0x222   :  { %s1083_s23 = sshra.s32 %s1655_s19, 3  ;;  %s1086_s25 = sand.u32 7, %s1655_s19 }
 0x223   :  { %s1679_s26 = sshll.u32 %s1083_s23, 5  ;;  %s1525_s19 = sshll.u32 %s2099_s18, 4  ;;  %s1526_s19 = int_to_ptr.vmem [resolvable:$true] %s1525_s19 }
 0x224   :  { %s1089_s27 = sadd.s32 %s1679_s26, %s1086_s25  ;;  %s2055_s20 = scalar_lea.vmem %s1526_s19, 128 }
 0x225   :  { %s1090_s28 = scalar_lea.vmem [#allocation7], %s1089_s27  ;;  %p2056_p11 = scmp.ne.s32.totalorder %s1526_s19, %s2055_s20 }
 0x226   :  { %p2060_p12 = scmp.lt.s32.totalorder %s1526_s19, %s1526_s19  ;;  %p2061_p13 = scmp.lt.s32.totalorder %s2055_s20, %s2055_s20 }
 0x228   :  { %v1860_v38 = vpop.eup %1859  ;;  %p2062_p0 = por %p2061_p13, %p2060_p12 }
 0x229   :  { %v538_v40 = vmul.f32 0.5, %v1860_v38 }
 0x22a   :  { %v1862_v42 = vpop.eup %1861  ;;  %p2063_p1 = pnand %p2062_p0, %p2056_p11 }
 0x22b   :  { %v539_v43 = vadd.f32 0.5, %v538_v40  ;;  %v542_v44 = vmul.f32 0.5, %v1862_v42  ;;  %v1864_v45 = vpop.eup %1863 }
 0x22c   :  { %v1866_v47 = vpop.eup %1865 }
 0x22d   :  { %v543_v41 = vadd.f32 0.5, %v542_v44  ;;  %v550_v48 = vmul.f32 %v1864_v45, %v539_v43  ;;  %v547_v51 = vmul.f32 0.5, %v1866_v47 }
 0x22f   :  { %v549_v46 = vmul.f32 %v543_v41, %v2315_v39  ;;  %v548_v52 = vadd.f32 0.5, %v547_v51  ;;  %v578_v39 = vld [vmem:[#allocation2] sm:$0xff] }
 0x230   :  { %693 = vst.msk [vmem:[#allocation2] ss:$8 sm:$0xf] %vm2234_vm0, %v692_v58  ;;  %705 = vst.msk [vmem:[#allocation2 + $0x1] ss:$8 sm:$0xf] %vm2234_vm0, %v704_v59 }
 0x231   :  { %v2357_v50 = vadd.f32 %v550_v48, %v549_v46 }
 0x233   :  { %1867 = vtanh.f32 %v2357_v50 }
 0x240   :  { %v1868_v49 = vpop.eup %1867 }
 0x241   :  { %v553_v53 = vmul.f32 %v1868_v49, %v548_v52 }
 0x243   :  { %v582_v54 = vpack.c.bf16 %v553_v53, %v553_v53 }
 0x245   :  { %616 = vmatmul.mubr.bf16.vlgmr.msra.gmra.mxu0 %v582_v54  ;;  %657 = vmatmul.mubr.bf16.vlgmr.msra.gmra.mxu1 %v582_v54 }
 0x246   :  { %713 = vmatpush1.bf16.msra.mxu0 %v2157_v1  ;;  %754 = vmatpush1.bf16.msra.mxu1 %v2170_v5 }
 0x247   :  { %714 = vmatprep.subr.bf16.mxu0 %v2173_v6  ;;  %755 = vmatprep.subr.bf16.mxu1 %v2178_v8 }
 0x248   :  { %744 = vmatprep.mubr.bf16.mxu0 %v2096_v2  ;;  %785 = vmatprep.mubr.bf16.mxu1 %v2096_v2 }
 0x24a   :  { %715 = vmatpush1.bf16.msra.mxu0 %v2175_v7  ;;  %756 = vmatpush1.bf16.msra.mxu1 %v2184_v9 }
 0x24b   :  { %716 = vmatprep.subr.bf16.mxu0 %v2187_v10  ;;  %757 = vmatprep.subr.bf16.mxu1 %v2192_v12 }
 0x24e   :  { %717 = vmatpush1.bf16.msra.mxu0 %v2190_v11  ;;  %758 = vmatpush1.bf16.msra.mxu1 %v2198_v14 }
 0x24f   :  { %718 = vmatprep.subr.bf16.mxu0 %v2195_v13  ;;  %759 = vmatprep.subr.bf16.mxu1 %v2202_v15 }
 0x252   :  { %719 = vmatpush1.bf16.msra.mxu0 %v2205_v16  ;;  %760 = vmatpush1.bf16.msra.mxu1 %v2213_v18 }
 0x253   :  { %720 = vmatprep.subr.bf16.mxu0 %v2209_v17  ;;  %761 = vmatprep.subr.bf16.mxu1 %v2217_v19 }
 0x256   :  { %721 = vmatpush1.bf16.msra.mxu0 %v2220_v20  ;;  %762 = vmatpush1.bf16.msra.mxu1 %v2226_v23 }
 0x257   :  { %722 = vmatprep.subr.bf16.mxu0 %v2223_v22  ;;  %763 = vmatprep.subr.bf16.mxu1 %v2229_v24 }
 0x25a   :  { %723 = vmatpush1.bf16.msra.mxu0 %v2232_v25  ;;  %764 = vmatpush1.bf16.msra.mxu1 %v2242_v28 }
 0x25b   :  { %724 = vmatprep.subr.bf16.mxu0 %v2239_v27  ;;  %765 = vmatprep.subr.bf16.mxu1 %v2245_v30 }
 0x25e   :  { %725 = vmatpush1.bf16.msra.mxu0 %v2250_v32  ;;  %766 = vmatpush1.bf16.msra.mxu1 %v2258_v34 }
 0x25f   :  { %726 = vmatprep.subr.bf16.mxu0 %v2255_v33  ;;  %767 = vmatprep.subr.bf16.mxu1 %v2261_v35 }
 0x262   :  { %727 = vmatpush1.bf16.msra.mxu0 %v2264_v36  ;;  %768 = vmatpush1.bf16.msra.mxu1 %v2268_v37 }
 0x263   :  { %841 = vmatprep.subr.bf16.mxu0 %v2155_v0  ;;  %882 = vmatprep.subr.bf16.mxu1 %v2168_v4 }
 0x305   :  { %v617_v60 = vpop.f32.mrf.mxu0  ;;  %v658_v61 = vpop.f32.mrf.mxu1 }
 0x306   :  { %v618_v62 = vadd.f32 %v617_v60, %v578_v39  ;;  %v659_v41 = vadd.f32 %v658_v61, %v580_v55 }
 0x307   :  { %v619_v63 = vpop.f32.mrf.mxu0  ;;  %v660_v21 = vpop.f32.mrf.mxu1 }
 0x308   :  { %v665_v29 = vmul.f32 0.5, %v618_v62  ;;  %v620_v31 = vadd.f32 %v619_v63, %v579_v56  ;;  %v661_v45 = vadd.f32 %v660_v21, %v581_v57  ;;  %v709_v63 = vld [vmem:[#allocation2 + $0x10] sm:$0xff]  ;;  %v708_v21 = vld [vmem:[#allocation2 + $0x8] sm:$0xff] }
 0x309   :  { %v621_v38 = vpop.f32.mrf.mxu0  ;;  %v662_v40 = vpop.f32.mrf.mxu1 }
 0x30a   :  { %1869 = vtanh.f32 %v665_v29  ;;  %v669_v42 = vmul.f32 0.5, %v620_v31  ;;  %v674_v46 = vmul.f32 0.5, %v661_v45  ;;  %v710_v29 = vld [vmem:[#allocation2 + $0x18] sm:$0xff] }
 0x30b   :  { %v622_v43 = vpop.f32.mrf.mxu0  ;;  %v663_v44 = vpop.f32.mrf.mxu1  ;;  %v821_v31 = vld [vmem:[%s820_s5] ss:$8 sm:$0xf]  ;;  %s1661_s5 = sld [smem:[#allocation3 + $0x381]] }
 0x30c   :  { %1871 = vtanh.f32 %v669_v42 }
 0x30d   :  { %1873 = vtanh.f32 %v659_v41 }
 0x30e   :  { %1875 = vtanh.f32 %v674_v46 }
 0x311   :  { %s1212_s9 = sshra.s32 %s1661_s5, 3  ;;  %s1215_s11 = sand.u32 7, %s1661_s5 }
 0x312   :  { %s1681_s0 = sshll.u32 %s1212_s9, 5 }
 0x313   :  { %s1218_s13 = sadd.s32 %s1681_s0, %s1215_s11 }
 0x314   :  { %s1219_s14 = scalar_lea.vmem [#allocation7], %s1218_s13 }
 0x317   :  { %v1870_v48 = vpop.eup %1869 }
 0x318   :  { %v667_v47 = vmul.f32 0.5, %v1870_v48 }
 0x319   :  { %v1872_v51 = vpop.eup %1871 }
 0x31a   :  { %v668_v52 = vadd.f32 0.5, %v667_v47  ;;  %v671_v49 = vmul.f32 0.5, %v1872_v51  ;;  %v1874_v54 = vpop.eup %1873 }
 0x31b   :  { %v1876_v55 = vpop.eup %1875 }
 0x31c   :  { %v672_v53 = vadd.f32 0.5, %v671_v49  ;;  %v679_v56 = vmul.f32 %v1874_v54, %v668_v52  ;;  %v676_v59 = vmul.f32 0.5, %v1876_v55 }
 0x31e   :  { %v678_v39 = vmul.f32 %v672_v53, %v2357_v50  ;;  %v677_v60 = vadd.f32 0.5, %v676_v59  ;;  %v707_v50 = vld [vmem:[#allocation2] sm:$0xff] }
 0x31f   :  { %822 = vst.msk [vmem:[#allocation2] ss:$8 sm:$0xf] %vm2234_vm0, %v821_v31 }
 0x320   :  { %v2399_v58 = vadd.f32 %v679_v56, %v678_v39 }
 0x322   :  { %1877 = vtanh.f32 %v2399_v58 }
 0x32f   :  { %v1878_v57 = vpop.eup %1877 }
 0x330   :  { %v682_v61 = vmul.f32 %v1878_v57, %v677_v60 }
 0x332   :  { %v711_v62 = vpack.c.bf16 %v682_v61, %v682_v61 }
 0x334   :  { %745 = vmatmul.mubr.bf16.vlgmr.msra.gmra.mxu0 %v711_v62  ;;  %786 = vmatmul.mubr.bf16.vlgmr.msra.gmra.mxu1 %v711_v62 }
 0x335   :  { %842 = vmatpush1.bf16.msra.mxu0 %v2157_v1  ;;  %883 = vmatpush1.bf16.msra.mxu1 %v2170_v5 }
 0x336   :  { %843 = vmatprep.subr.bf16.mxu0 %v2173_v6  ;;  %884 = vmatprep.subr.bf16.mxu1 %v2178_v8 }
 0x337   :  { %873 = vmatprep.mubr.bf16.mxu0 %v2096_v2  ;;  %914 = vmatprep.mubr.bf16.mxu1 %v2096_v2 }
 0x339   :  { %844 = vmatpush1.bf16.msra.mxu0 %v2175_v7  ;;  %885 = vmatpush1.bf16.msra.mxu1 %v2184_v9 }
 0x33a   :  { %845 = vmatprep.subr.bf16.mxu0 %v2187_v10  ;;  %886 = vmatprep.subr.bf16.mxu1 %v2192_v12 }
 0x33d   :  { %846 = vmatpush1.bf16.msra.mxu0 %v2190_v11  ;;  %887 = vmatpush1.bf16.msra.mxu1 %v2198_v14 }
 0x33e   :  { %847 = vmatprep.subr.bf16.mxu0 %v2195_v13  ;;  %888 = vmatprep.subr.bf16.mxu1 %v2202_v15 }
 0x341   :  { %848 = vmatpush1.bf16.msra.mxu0 %v2205_v16  ;;  %889 = vmatpush1.bf16.msra.mxu1 %v2213_v18 }
 0x342   :  { %849 = vmatprep.subr.bf16.mxu0 %v2209_v17  ;;  %890 = vmatprep.subr.bf16.mxu1 %v2217_v19 }
 0x345   :  { %850 = vmatpush1.bf16.msra.mxu0 %v2220_v20  ;;  %891 = vmatpush1.bf16.msra.mxu1 %v2226_v23 }
 0x346   :  { %851 = vmatprep.subr.bf16.mxu0 %v2223_v22  ;;  %892 = vmatprep.subr.bf16.mxu1 %v2229_v24 }
 0x349   :  { %852 = vmatpush1.bf16.msra.mxu0 %v2232_v25  ;;  %893 = vmatpush1.bf16.msra.mxu1 %v2242_v28 }
 0x34a   :  { %853 = vmatprep.subr.bf16.mxu0 %v2239_v27  ;;  %894 = vmatprep.subr.bf16.mxu1 %v2245_v30 }
 0x34d   :  { %854 = vmatpush1.bf16.msra.mxu0 %v2250_v32  ;;  %895 = vmatpush1.bf16.msra.mxu1 %v2258_v34 }
 0x34e   :  { %855 = vmatprep.subr.bf16.mxu0 %v2255_v33  ;;  %896 = vmatprep.subr.bf16.mxu1 %v2261_v35 }
 0x351   :  { %856 = vmatpush1.bf16.msra.mxu0 %v2264_v36  ;;  %897 = vmatpush1.bf16.msra.mxu1 %v2268_v37 }
 0x352   :  { %970 = vmatprep.subr.bf16.mxu0 %v2155_v0  ;;  %1011 = vmatprep.subr.bf16.mxu1 %v2168_v4  ;;  %v833_v0 = vld [vmem:[%s832_s30] ss:$8 sm:$0xf]  ;;  %s1203_s30 = sand.u32 7, %s1658_s3 }
 0x353   :  { %834 = vst.msk [vmem:[#allocation2 + $0x1] ss:$8 sm:$0xf] %vm2234_vm0, %v833_v0  ;;  %s1206_s10 = sadd.s32 %s1680_s8, %s1203_s30 }
 0x354   :  { %s1207_s12 = scalar_lea.vmem [#allocation7], %s1206_s10 }
 0x3f4   :  { %v746_v38 = vpop.f32.mrf.mxu0  ;;  %v787_v40 = vpop.f32.mrf.mxu1 }
 0x3f5   :  { %v747_v42 = vadd.f32 %v746_v38, %v707_v50  ;;  %v788_v49 = vadd.f32 %v787_v40, %v709_v63 }
 0x3f6   :  { %v748_v43 = vpop.f32.mrf.mxu0  ;;  %v789_v44 = vpop.f32.mrf.mxu1 }
 0x3f7   :  { %v794_v41 = vmul.f32 0.5, %v747_v42  ;;  %v749_v45 = vadd.f32 %v748_v43, %v708_v21  ;;  %v790_v53 = vadd.f32 %v789_v44, %v710_v29 }
 0x3f8   :  { %v750_v46 = vpop.f32.mrf.mxu0  ;;  %v791_v48 = vpop.f32.mrf.mxu1 }
 0x3f9   :  { %1879 = vtanh.f32 %v794_v41  ;;  %v798_v47 = vmul.f32 0.5, %v749_v45  ;;  %v803_v54 = vmul.f32 0.5, %v790_v53 }
 0x3fa   :  { %v751_v51 = vpop.f32.mrf.mxu0  ;;  %v792_v52 = vpop.f32.mrf.mxu1 }
 0x3fb   :  { %1881 = vtanh.f32 %v798_v47 }
 0x3fc   :  { %1883 = vtanh.f32 %v788_v49 }
 0x3fd   :  { %1885 = vtanh.f32 %v803_v54 }
 0x406   :  { %v1880_v39 = vpop.eup %1879 }
 0x407   :  { %v796_v56 = vmul.f32 0.5, %v1880_v39  ;;  %v2488_v39 = vld [vmem:[#allocation8 + $0xe0] ss:$16 sps:$4 sm:$0xff]  }
 0x408   :  { %v1882_v55 = vpop.eup %1881 }
 0x409   :  { %v797_v59 = vadd.f32 0.5, %v796_v56  ;;  %v800_v60 = vmul.f32 0.5, %v1882_v55  ;;  %v1884_v61 = vpop.eup %1883  ;;  %v2491_v56 = vld [vmem:[#allocation8 + $0xe8] ss:$16 sps:$4 sm:$0xff]   ;;  %v2494_v55 = vld [vmem:[#allocation8 + $0xc4] ss:$16 sps:$4 sm:$0xff]  }
 0x40a   :  { %v1886_v63 = vpop.eup %1885 }
 0x40b   :  { %v801_v57 = vadd.f32 0.5, %v800_v60  ;;  %v808_v50 = vmul.f32 %v1884_v61, %v797_v59  ;;  %v805_v31 = vmul.f32 0.5, %v1886_v63  ;;  %v2497_v59 = vld [vmem:[#allocation8 + $0xcc] ss:$16 sps:$4 sm:$0xff]   ;;  %v2502_v60 = vld [vmem:[#allocation8 + $0xc0] ss:$16 sps:$4 sm:$0xff]  }
 0x40c   :  { %v2508_v61 = vld [vmem:[#allocation8 + $0xa4] ss:$16 sps:$4 sm:$0xff]  }
 0x40d   :  { %v807_v62 = vmul.f32 %v801_v57, %v2399_v58  ;;  %v806_v0 = vadd.f32 0.5, %v805_v31  ;;  %v2505_v57 = vld [vmem:[#allocation8 + $0xc8] ss:$16 sps:$4 sm:$0xff]   ;;  %v2520_v63 = vld [vmem:[#allocation8 + $0x84] ss:$16 sps:$4 sm:$0xff]  }
 0x40e   :  { %v2523_v31 = vld [vmem:[#allocation8 + $0x8c] ss:$16 sps:$4 sm:$0xff]  }
 0x40f   :  { %v2441_v21 = vadd.f32 %v808_v50, %v807_v62  ;;  %v2511_v62 = vld [vmem:[#allocation8 + $0xac] ss:$16 sps:$4 sm:$0xff]   ;;  %v2514_v50 = vld [vmem:[#allocation8 + $0xa0] ss:$16 sps:$4 sm:$0xff]  }
 0x411   :  { %1887 = vtanh.f32 %v2441_v21 }
 0x41e   :  { %v1888_v29 = vpop.eup %1887 }
 0x41f   :  { %v811_v38 = vmul.f32 %v1888_v29, %v806_v0  ;;  %v2526_v0 = vld [vmem:[#allocation8 + $0x80] ss:$16 sps:$4 sm:$0xff]   ;;  %v2529_v29 = vld [vmem:[#allocation8 + $0x88] ss:$16 sps:$4 sm:$0xff]  }
 0x421   :  { %v840_v40 = vpack.c.bf16 %v811_v38, %v811_v38  ;;  %v2532_v38 = vld [vmem:[#allocation8 + $0x64] ss:$16 sps:$4 sm:$0xff]  }
 0x423   :  { %874 = vmatmul.mubr.bf16.vlgmr.msra.gmra.mxu0 %v840_v40  ;;  %915 = vmatmul.mubr.bf16.vlgmr.msra.gmra.mxu1 %v840_v40  ;;  %v2535_v40 = vld [vmem:[#allocation8 + $0x6c] ss:$16 sps:$4 sm:$0xff]  }
 0x424   :  { %971 = vmatpush1.bf16.msra.mxu0 %v2157_v1  ;;  %1012 = vmatpush1.bf16.msra.mxu1 %v2170_v5  ;;  %v2476_v1 = vld [vmem:[#allocation8 + $0xe4] ss:$16 sps:$4 sm:$0xff]  }
 0x425   :  { %972 = vmatprep.subr.bf16.mxu0 %v2173_v6  ;;  %1013 = vmatprep.subr.bf16.mxu1 %v2178_v8  ;;  %v836_v5 = vld [vmem:[#allocation2] sm:$0xff]  ;;  %v838_v6 = vld [vmem:[#allocation2 + $0x10] sm:$0xff]  ;;  %v839_v8 = vld [vmem:[#allocation2 + $0x18] sm:$0xff] }
 0x426   :  { %1002 = vmatprep.mubr.bf16.mxu0 %v2096_v2  ;;  %1043 = vmatprep.mubr.bf16.mxu1 %v2096_v2 }
 0x428   :  { %973 = vmatpush1.bf16.msra.mxu0 %v2175_v7  ;;  %1014 = vmatpush1.bf16.msra.mxu1 %v2184_v9  ;;  %v837_v7 = vld [vmem:[#allocation2 + $0x8] sm:$0xff] }
 0x429   :  { %974 = vmatprep.subr.bf16.mxu0 %v2187_v10  ;;  %1015 = vmatprep.subr.bf16.mxu1 %v2192_v12  ;;  %v950_v9 = vld [vmem:[%s949_s15] ss:$8 sm:$0xf] }
 0x42a   :  { %951 = vst.msk [vmem:[#allocation2] ss:$8 sm:$0xf] %vm2234_vm0, %v950_v9  ;;  %v2550_v9 = vld [vmem:[#allocation8 + $0x40] ss:$16 sps:$4 sm:$0xff]  }
 0x42c   :  { %975 = vmatpush1.bf16.msra.mxu0 %v2190_v11  ;;  %1016 = vmatpush1.bf16.msra.mxu1 %v2198_v14 }
 0x42d   :  { %976 = vmatprep.subr.bf16.mxu0 %v2195_v13  ;;  %1017 = vmatprep.subr.bf16.mxu1 %v2202_v15 }
 0x430   :  { %977 = vmatpush1.bf16.msra.mxu0 %v2205_v16  ;;  %1018 = vmatpush1.bf16.msra.mxu1 %v2213_v18 }
 0x431   :  { %978 = vmatprep.subr.bf16.mxu0 %v2209_v17  ;;  %1019 = vmatprep.subr.bf16.mxu1 %v2217_v19 }
 0x434   :  { %979 = vmatpush1.bf16.msra.mxu0 %v2220_v20  ;;  %1020 = vmatpush1.bf16.msra.mxu1 %v2226_v23 }
 0x435   :  { %980 = vmatprep.subr.bf16.mxu0 %v2223_v22  ;;  %1021 = vmatprep.subr.bf16.mxu1 %v2229_v24 }
 0x438   :  { %981 = vmatpush1.bf16.msra.mxu0 %v2232_v25  ;;  %1022 = vmatpush1.bf16.msra.mxu1 %v2242_v28 }
 0x439   :  { %982 = vmatprep.subr.bf16.mxu0 %v2239_v27  ;;  %1023 = vmatprep.subr.bf16.mxu1 %v2245_v30 }
 0x43c   :  { %983 = vmatpush1.bf16.msra.mxu0 %v2250_v32  ;;  %1024 = vmatpush1.bf16.msra.mxu1 %v2258_v34 }
 0x43d   :  { %984 = vmatprep.subr.bf16.mxu0 %v2255_v33  ;;  %1025 = vmatprep.subr.bf16.mxu1 %v2261_v35 }
 0x440   :  { %985 = vmatpush1.bf16.msra.mxu0 %v2264_v36  ;;  %1026 = vmatpush1.bf16.msra.mxu1 %v2268_v37 }
 0x441   :  { %1099 = vmatprep.subr.bf16.mxu0 %v2476_v1  ;;  %1140 = vmatprep.subr.bf16.mxu1 %v2168_v4  ;;  %v962_v4 = vld [vmem:[%s961_s17] ss:$8 sm:$0xf] }
 0x442   :  { %963 = vst.msk [vmem:[#allocation2 + $0x1] ss:$8 sm:$0xf] %vm2234_vm0, %v962_v4  ;;  %v2553_v4 = vld [vmem:[#allocation8 + $0x48] ss:$16 sps:$4 sm:$0xff]  }
 0x4e3   :  { %v875_v10 = vpop.f32.mrf.mxu0  ;;  %v916_v11 = vpop.f32.mrf.mxu1 }
 0x4e4   :  { %v876_v12 = vadd.f32 %v875_v10, %v836_v5  ;;  %v917_v23 = vadd.f32 %v916_v11, %v838_v6  ;;  %v2538_v5 = vld [vmem:[#allocation8 + $0x60] ss:$16 sps:$4 sm:$0xff]   ;;  %v2541_v6 = vld [vmem:[#allocation8 + $0x68] ss:$16 sps:$4 sm:$0xff]   ;;  %v2556_v10 = vld [vmem:[#allocation8 + $0x24] ss:$16 sps:$4 sm:$0xff]  }
 0x4e5   :  { %v877_v13 = vpop.f32.mrf.mxu0  ;;  %v918_v14 = vpop.f32.mrf.mxu1  ;;  %v1955_v11 = vld [vmem:[#allocation8 + $0xec] ss:$16 sps:$4 sm:$0xff]  }
 0x4e6   :  { %v923_v15 = vmul.f32 0.5, %v876_v12  ;;  %v878_v16 = vadd.f32 %v877_v13, %v837_v7  ;;  %v919_v24 = vadd.f32 %v918_v14, %v839_v8  ;;  %v2544_v7 = vld [vmem:[#allocation8 + $0x44] ss:$16 sps:$4 sm:$0xff]   ;;  %v2547_v8 = vld [vmem:[#allocation8 + $0x4c] ss:$16 sps:$4 sm:$0xff]  }
 0x4e7   :  { %v879_v17 = vpop.f32.mrf.mxu0  ;;  %v920_v18 = vpop.f32.mrf.mxu1 }
 0x4e8   :  { %1889 = vtanh.f32 %v923_v15  ;;  %v927_v19 = vmul.f32 0.5, %v878_v16  ;;  %v932_v25 = vmul.f32 0.5, %v919_v24 }
 0x4e9   :  { %v880_v20 = vpop.f32.mrf.mxu0  ;;  %v921_v22 = vpop.f32.mrf.mxu1 }
 0x4ea   :  { %1891 = vtanh.f32 %v927_v19 }
 0x4eb   :  { %1893 = vtanh.f32 %v917_v23 }
 0x4ec   :  { %1895 = vtanh.f32 %v932_v25 }
 0x4f5   :  { %v1890_v27 = vpop.eup %1889 }
 0x4f6   :  { %v925_v28 = vmul.f32 0.5, %v1890_v27 }
 0x4f7   :  { %v1892_v58 = vpop.eup %1891 }
 0x4f8   :  { %v926_v42 = vadd.f32 0.5, %v925_v28  ;;  %v929_v43 = vmul.f32 0.5, %v1892_v58  ;;  %v1894_v41 = vpop.eup %1893 }
 0x4f9   :  { %v1896_v47 = vpop.eup %1895 }
 0x4fa   :  { %v930_v44 = vadd.f32 0.5, %v929_v43  ;;  %v937_v46 = vmul.f32 %v1894_v41, %v926_v42  ;;  %v934_v51 = vmul.f32 0.5, %v1896_v47 }
 0x4fc   :  { %v936_v45 = vmul.f32 %v930_v44, %v2441_v21  ;;  %v935_v52 = vadd.f32 0.5, %v934_v51  ;;  %v2517_v21 = vld [vmem:[#allocation8 + $0xa8] ss:$16 sps:$4 sm:$0xff]  }
 0x4fe   :  { %v2485_v48 = vadd.f32 %v937_v46, %v936_v45 }
 0x500   :  { %1897 = vtanh.f32 %v2485_v48 }
 0x50d   :  { %v1898_v49 = vpop.eup %1897 }
 0x50e   :  { %v940_v53 = vmul.f32 %v1898_v49, %v935_v52 }
 0x510   :  { %v969_v54 = vpack.c.bf16 %v940_v53, %v940_v53 }
 0x512   :  { %1003 = vmatmul.mubr.bf16.vlgmr.msra.gmra.mxu0 %v969_v54  ;;  %1044 = vmatmul.mubr.bf16.vlgmr.msra.gmra.mxu1 %v969_v54 }
 0x513   :  { %1100 = vmatpush1.bf16.msra.mxu0 %v2488_v39  ;;  %1141 = vmatpush1.bf16.msra.mxu1 %v2491_v56 }
 0x514   :  { %1101 = vmatprep.subr.bf16.mxu0 %v2494_v55  ;;  %1142 = vmatprep.subr.bf16.mxu1 %v2497_v59 }
 0x515   :  { %1131 = vmatprep.mubr.bf16.mxu0 %v2096_v2  ;;  %1172 = vmatprep.mubr.bf16.mxu1 %v2096_v2 }
 0x517   :  { %1102 = vmatpush1.bf16.msra.mxu0 %v2502_v60  ;;  %1143 = vmatpush1.bf16.msra.mxu1 %v2505_v57 }
 0x518   :  { %1103 = vmatprep.subr.bf16.mxu0 %v2508_v61  ;;  %1144 = vmatprep.subr.bf16.mxu1 %v2511_v62 }
 0x51b   :  { %1104 = vmatpush1.bf16.msra.mxu0 %v2514_v50  ;;  %1145 = vmatpush1.bf16.msra.mxu1 %v2517_v21 }
 0x51c   :  { %1105 = vmatprep.subr.bf16.mxu0 %v2520_v63  ;;  %1146 = vmatprep.subr.bf16.mxu1 %v2523_v31 }
 0x51f   :  { %1106 = vmatpush1.bf16.msra.mxu0 %v2526_v0  ;;  %1147 = vmatpush1.bf16.msra.mxu1 %v2529_v29 }
 0x520   :  { %1107 = vmatprep.subr.bf16.mxu0 %v2532_v38  ;;  %1148 = vmatprep.subr.bf16.mxu1 %v2535_v40 }
 0x523   :  { %1108 = vmatpush1.bf16.msra.mxu0 %v2538_v5  ;;  %1149 = vmatpush1.bf16.msra.mxu1 %v2541_v6 }
 0x524   :  { %1109 = vmatprep.subr.bf16.mxu0 %v2544_v7  ;;  %1150 = vmatprep.subr.bf16.mxu1 %v2547_v8 }
 0x527   :  { %1110 = vmatpush1.bf16.msra.mxu0 %v2550_v9  ;;  %1151 = vmatpush1.bf16.msra.mxu1 %v2553_v4 }
 0x528   :  { %1111 = vmatprep.subr.bf16.mxu0 %v2556_v10  ;;  %1152 = vmatprep.subr.bf16.mxu1 %v2245_v30  ;;  %v965_v30 = vld [vmem:[#allocation2] sm:$0xff] }
 0x52b   :  { %1112 = vmatpush1.bf16.msra.mxu0 %v2250_v32  ;;  %1153 = vmatpush1.bf16.msra.mxu1 %v2258_v34  ;;  %v967_v32 = vld [vmem:[#allocation2 + $0x10] sm:$0xff]  ;;  %v968_v34 = vld [vmem:[#allocation2 + $0x18] sm:$0xff] }
 0x52c   :  { %1113 = vmatprep.subr.bf16.mxu0 %v2255_v33  ;;  %1154 = vmatprep.subr.bf16.mxu1 %v2261_v35  ;;  %v966_v33 = vld [vmem:[#allocation2 + $0x8] sm:$0xff] }
 0x52d   :  { %v1079_v35 = vld [vmem:[%s1078_s1] ss:$8 sm:$0xf] }
 0x52e   :  { %1080 = vst.msk [vmem:[#allocation2] ss:$8 sm:$0xf] %vm2234_vm0, %v1079_v35 }
 0x52f   :  { %1114 = vmatpush1.bf16.msra.mxu0 %v2264_v36  ;;  %1155 = vmatpush1.bf16.msra.mxu1 %v2268_v37  ;;  %v1091_v36 = vld [vmem:[%s1090_s28] ss:$8 sm:$0xf] }
 0x530   :  { %1228 = vmatprep.subr.bf16.mxu0 %v2476_v1  ;;  %1269 = vmatprep.subr.bf16.mxu1 %v1955_v11  ;;  %1092 = vst.msk [vmem:[#allocation2 + $0x1] ss:$8 sm:$0xf] %vm2234_vm0, %v1091_v36 }
 0x5d2   :  { %v1004_v37 = vpop.f32.mrf.mxu0  ;;  %v1045_v1 = vpop.f32.mrf.mxu1 }
 0x5d3   :  { %v1005_v12 = vadd.f32 %v1004_v37, %v965_v30  ;;  %v1046_v23 = vadd.f32 %v1045_v1, %v967_v32 }
 0x5d4   :  { %v1006_v13 = vpop.f32.mrf.mxu0  ;;  %v1047_v14 = vpop.f32.mrf.mxu1 }
 0x5d5   :  { %v1052_v15 = vmul.f32 0.5, %v1005_v12  ;;  %v1007_v16 = vadd.f32 %v1006_v13, %v966_v33  ;;  %v1048_v24 = vadd.f32 %v1047_v14, %v968_v34 }
 0x5d6   :  { %v1008_v17 = vpop.f32.mrf.mxu0  ;;  %v1049_v18 = vpop.f32.mrf.mxu1 }
 0x5d7   :  { %1899 = vtanh.f32 %v1052_v15  ;;  %v1056_v19 = vmul.f32 0.5, %v1007_v16  ;;  %v1061_v25 = vmul.f32 0.5, %v1048_v24  ;;  %v1343_v24 = vld [vmem:[#allocation10 + $0x70] sm:$0xff] }
 0x5d8   :  { %v1009_v20 = vpop.f32.mrf.mxu0  ;;  %v1050_v22 = vpop.f32.mrf.mxu1 }
 0x5d9   :  { %1901 = vtanh.f32 %v1056_v19 }
 0x5da   :  { %1903 = vtanh.f32 %v1046_v23  ;;  %v1344_v23 = vld [vmem:[#allocation10 + $0x78] sm:$0xff] }
 0x5db   :  { %1905 = vtanh.f32 %v1061_v25  ;;  %v1342_v25 = vld [vmem:[#allocation10 + $0x68] sm:$0xff] }
 0x5e4   :  { %v1900_v27 = vpop.eup %1899 }
 0x5e5   :  { %v1054_v28 = vmul.f32 0.5, %v1900_v27  ;;  %v1341_v27 = vld [vmem:[#allocation10 + $0x60] sm:$0xff] }
 0x5e6   :  { %v1902_v58 = vpop.eup %1901 }
 0x5e7   :  { %v1055_v42 = vadd.f32 0.5, %v1054_v28  ;;  %v1058_v43 = vmul.f32 0.5, %v1902_v58  ;;  %v1904_v41 = vpop.eup %1903  ;;  %v1340_v28 = vld [vmem:[#allocation10 + $0x58] sm:$0xff]  ;;  %v1339_v58 = vld [vmem:[#allocation10 + $0x50] sm:$0xff] }
 0x5e8   :  { %v1906_v51 = vpop.eup %1905 }
 0x5e9   :  { %v1059_v44 = vadd.f32 0.5, %v1058_v43  ;;  %v1066_v46 = vmul.f32 %v1904_v41, %v1055_v42  ;;  %v1063_v52 = vmul.f32 0.5, %v1906_v51  ;;  %v1338_v42 = vld [vmem:[#allocation10 + $0x48] sm:$0xff]  ;;  %v1337_v43 = vld [vmem:[#allocation10 + $0x40] sm:$0xff]  ;;  %v1335_v41 = vld [vmem:[#allocation10 + $0x30] sm:$0xff] }
 0x5ea   :  { %v1331_v51 = vld [vmem:[#allocation10 + $0x10] sm:$0xff] }
 0x5eb   :  { %v1065_v45 = vmul.f32 %v1059_v44, %v2485_v48  ;;  %v1064_v49 = vadd.f32 0.5, %v1063_v52  ;;  %v1957_v48 = vld [vmem:[#allocation8 + $0x20] ss:$16 sps:$4 sm:$0xff]   ;;  %v1336_v44 = vld [vmem:[#allocation10 + $0x38] sm:$0xff]  ;;  %v1330_v52 = vld [vmem:[#allocation10 + $0x8] sm:$0xff] }
 0x5ed   :  { %v2572_v47 = vadd.f32 %v1066_v46, %v1065_v45  ;;  %v1334_v45 = vld [vmem:[#allocation10 + $0x28] sm:$0xff]  ;;  %v1333_v46 = vld [vmem:[#allocation10 + $0x20] sm:$0xff] }
 0x5ef   :  { %1907 = vtanh.f32 %v2572_v47 }
 0x5fc   :  { %v1908_v53 = vpop.eup %1907 }
 0x5fd   :  { %v1069_v54 = vmul.f32 %v1908_v53, %v1064_v49  ;;  %v1329_v49 = vld [vmem:[#allocation10] sm:$0xff]  ;;  %v1440_v53 = vld [vmem:[#allocation11 + $0x78] sm:$0xff] }
 0x5ff   :  { %v1098_v11 = vpack.c.bf16 %v1069_v54, %v1069_v54  ;;  %v1439_v54 = vld [vmem:[#allocation11 + $0x70] sm:$0xff] }
 0x601   :  { %1132 = vmatmul.mubr.bf16.vlgmr.msra.gmra.mxu0 %v1098_v11  ;;  %1173 = vmatmul.mubr.bf16.vlgmr.msra.gmra.mxu1 %v1098_v11  ;;  %v1438_v11 = vld [vmem:[#allocation11 + $0x68] sm:$0xff] }
 0x602   :  { %1229 = vmatpush1.bf16.msra.mxu0 %v2488_v39  ;;  %1270 = vmatpush1.bf16.msra.mxu1 %v2491_v56  ;;  %v1958_v39 = vld [vmem:[#allocation8 + $0x28] ss:$16 sps:$4 sm:$0xff]   ;;  %v1959_v56 = vld [vmem:[#allocation8 + $0x4] ss:$16 sps:$4 sm:$0xff]  }
 0x603   :  { %1230 = vmatprep.subr.bf16.mxu0 %v2494_v55  ;;  %1271 = vmatprep.subr.bf16.mxu1 %v2497_v59  ;;  %v1960_v55 = vld [vmem:[#allocation8 + $0xc] ss:$16 sps:$4 sm:$0xff]   ;;  %v1961_v59 = vld [vmem:[#allocation8] ss:$16 sps:$4 sm:$0xff]  }
 0x604   :  { %1260 = vmatprep.mubr.bf16.mxu0 %v2096_v2  ;;  %1301 = vmatprep.mubr.bf16.mxu1 %v2096_v2  ;;  %v1956_v2 = vld [vmem:[#allocation8 + $0x2c] ss:$16 sps:$4 sm:$0xff]  }
 0x606   :  { %1231 = vmatpush1.bf16.msra.mxu0 %v2502_v60  ;;  %1272 = vmatpush1.bf16.msra.mxu1 %v2505_v57  ;;  %v1962_v60 = vld [vmem:[#allocation8 + $0x8] ss:$16 sps:$4 sm:$0xff]   ;;  %v1094_v57 = vld [vmem:[#allocation2] sm:$0xff] }
 0x607   :  { %1232 = vmatprep.subr.bf16.mxu0 %v2508_v61  ;;  %1273 = vmatprep.subr.bf16.mxu1 %v2511_v62  ;;  %v1096_v61 = vld [vmem:[#allocation2 + $0x10] sm:$0xff]  ;;  %v1095_v62 = vld [vmem:[#allocation2 + $0x8] sm:$0xff] }
 0x60a   :  { %1233 = vmatpush1.bf16.msra.mxu0 %v2514_v50  ;;  %1274 = vmatpush1.bf16.msra.mxu1 %v2517_v21  ;;  %v1097_v50 = vld [vmem:[#allocation2 + $0x18] sm:$0xff] }
 0x60b   :  { %1234 = vmatprep.subr.bf16.mxu0 %v2520_v63  ;;  %1275 = vmatprep.subr.bf16.mxu1 %v2523_v31  ;;  %v1208_v21 = vld [vmem:[%s1207_s12] ss:$8 sm:$0xf] }
 0x60c   :  { %1209 = vst.msk [vmem:[#allocation2] ss:$8 sm:$0xf] %vm2234_vm0, %v1208_v21  ;;  %v1220_v63 = vld [vmem:[%s1219_s14] ss:$8 sm:$0xf] }
 0x60d   :  { %1221 = vst.msk [vmem:[#allocation2 + $0x1] ss:$8 sm:$0xf] %vm2234_vm0, %v1220_v63 }
 0x60e   :  { %1235 = vmatpush1.bf16.msra.mxu0 %v2526_v0  ;;  %1276 = vmatpush1.bf16.msra.mxu1 %v2529_v29 }
 0x60f   :  { %1236 = vmatprep.subr.bf16.mxu0 %v2532_v38  ;;  %1277 = vmatprep.subr.bf16.mxu1 %v2535_v40 }
 0x612   :  { %1237 = vmatpush1.bf16.msra.mxu0 %v2538_v5  ;;  %1278 = vmatpush1.bf16.msra.mxu1 %v2541_v6 }
 0x613   :  { %1238 = vmatprep.subr.bf16.mxu0 %v2544_v7  ;;  %1279 = vmatprep.subr.bf16.mxu1 %v2547_v8 }
 0x616   :  { %1239 = vmatpush1.bf16.msra.mxu0 %v2550_v9  ;;  %1280 = vmatpush1.bf16.msra.mxu1 %v2553_v4 }
 0x617   :  { %1240 = vmatprep.subr.bf16.mxu0 %v2556_v10  ;;  %1281 = vmatprep.subr.bf16.mxu1 %v1956_v2  ;;  %v1437_v2 = vld [vmem:[#allocation11 + $0x60] sm:$0xff] }
 0x61a   :  { %1241 = vmatpush1.bf16.msra.mxu0 %v1957_v48  ;;  %1282 = vmatpush1.bf16.msra.mxu1 %v1958_v39  ;;  %v1436_v48 = vld [vmem:[#allocation11 + $0x58] sm:$0xff]  ;;  %v1435_v39 = vld [vmem:[#allocation11 + $0x50] sm:$0xff] }
 0x61b   :  { %1242 = vmatprep.subr.bf16.mxu0 %v1959_v56  ;;  %1283 = vmatprep.subr.bf16.mxu1 %v1960_v55  ;;  %v1434_v56 = vld [vmem:[#allocation11 + $0x48] sm:$0xff]  ;;  %v1433_v55 = vld [vmem:[#allocation11 + $0x40] sm:$0xff] }
 0x61e   :  { %1243 = vmatpush1.bf16.msra.mxu0 %v1961_v59  ;;  %1284 = vmatpush1.bf16.msra.mxu1 %v1962_v60  ;;  %v1432_v59 = vld [vmem:[#allocation11 + $0x38] sm:$0xff]  ;;  %v1431_v60 = vld [vmem:[#allocation11 + $0x30] sm:$0xff] }
 0x61f   :  { %1716 = vmatprep.subr.mxu0 %v2097_v3  ;;  %1751 = vmatprep.subr.mxu1 %v2097_v3 }
 0x6c1   :  { %v1133_v31 = vpop.f32.mrf.mxu0  ;;  %v1174_v0 = vpop.f32.mrf.mxu1 }
 0x6c2   :  { %v1134_v29 = vadd.f32 %v1133_v31, %v1094_v57  ;;  %v1175_v30 = vadd.f32 %v1174_v0, %v1096_v61  ;;  %v1430_v57 = vld [vmem:[#allocation11 + $0x28] sm:$0xff]  ;;  %v1429_v61 = vld [vmem:[#allocation11 + $0x20] sm:$0xff] }
 0x6c3   :  { %v1135_v38 = vpop.f32.mrf.mxu0  ;;  %v1176_v40 = vpop.f32.mrf.mxu1  ;;  %v1224_v31 = vld [vmem:[#allocation2 + $0x8] sm:$0xff] }
 0x6c4   :  { %v1181_v5 = vmul.f32 0.5, %v1134_v29  ;;  %v1136_v6 = vadd.f32 %v1135_v38, %v1095_v62  ;;  %v1177_v32 = vadd.f32 %v1176_v40, %v1097_v50  ;;  %v1428_v62 = vld [vmem:[#allocation11 + $0x18] sm:$0xff]  ;;  %v1223_v50 = vld [vmem:[#allocation2] sm:$0xff] }
 0x6c5   :  { %v1137_v7 = vpop.f32.mrf.mxu0  ;;  %v1178_v8 = vpop.f32.mrf.mxu1 }
 0x6c6   :  { %1909 = vtanh.f32 %v1181_v5  ;;  %v1185_v9 = vmul.f32 0.5, %v1136_v6  ;;  %v1190_v33 = vmul.f32 0.5, %v1177_v32  ;;  %v1225_v6 = vld [vmem:[#allocation2 + $0x10] sm:$0xff]  ;;  %v1226_v32 = vld [vmem:[#allocation2 + $0x18] sm:$0xff] }
 0x6c7   :  { %v1138_v4 = vpop.f32.mrf.mxu0  ;;  %v1179_v10 = vpop.f32.mrf.mxu1 }
 0x6c8   :  { %1911 = vtanh.f32 %v1185_v9 }
 0x6c9   :  { %1913 = vtanh.f32 %v1175_v30 }
 0x6ca   :  { %1915 = vtanh.f32 %v1190_v33 }
 0x6d3   :  { %v1910_v26 = vpop.eup %1909 }
 0x6d4   :  { %v1183_v34 = vmul.f32 0.5, %v1910_v26 }
 0x6d5   :  { %v1912_v35 = vpop.eup %1911 }
 0x6d6   :  { %v1184_v36 = vadd.f32 0.5, %v1183_v34  ;;  %v1187_v37 = vmul.f32 0.5, %v1912_v35  ;;  %v1914_v12 = vpop.eup %1913 }
 0x6d7   :  { %v1916_v16 = vpop.eup %1915 }
 0x6d8   :  { %v1188_v1 = vadd.f32 0.5, %v1187_v37  ;;  %v1195_v14 = vmul.f32 %v1914_v12, %v1184_v36  ;;  %v1192_v17 = vmul.f32 0.5, %v1916_v16 }
 0x6da   :  { %v1194_v13 = vmul.f32 %v1188_v1, %v2572_v47  ;;  %v1193_v18 = vadd.f32 0.5, %v1192_v17  ;;  %v1332_v47 = vld [vmem:[#allocation10 + $0x18] sm:$0xff] }
 0x6dc   :  { %v2607_v15 = vadd.f32 %v1195_v14, %v1194_v13 }
 0x6de   :  { %1917 = vtanh.f32 %v2607_v15 }
 0x6eb   :  { %v1918_v19 = vpop.eup %1917 }
 0x6ec   :  { %v1198_v20 = vmul.f32 %v1918_v19, %v1193_v18 }
 0x6ee   :  { %v1227_v22 = vpack.c.bf16 %v1198_v20, %v1198_v20 }
 0x6f0   :  { %1261 = vmatmul.mubr.bf16.vlgmr.msra.gmra.mxu0 %v1227_v22  ;;  %1302 = vmatmul.mubr.bf16.vlgmr.msra.gmra.mxu1 %v1227_v22 }
 0x6f1   :  { %1717 = vmatpush3.msra.mxu0 %v1344_v23  ;;  %1748 = vmatprep.mubr.msk.f32.mxu0 %vm2098_vm1, %v2097_v3 }
 0x6f2   :  { %1718 = vmatprep.subr.mxu0 %v2097_v3  ;;  %1783 = vmatprep.mubr.msk.f32.mxu1 %vm2098_vm1, %v2097_v3 }
 0x6f3   :  { %1719 = vmatpush3.msra.mxu0 %v1343_v24  ;;  %1752 = vmatpush3.msra.mxu1 %v1440_v53 }
 0x6f4   :  { %1720 = vmatprep.subr.mxu0 %v2097_v3  ;;  %1753 = vmatprep.subr.mxu1 %v2097_v3 }
 0x6f5   :  { %1721 = vmatpush3.msra.mxu0 %v1342_v25  ;;  %1754 = vmatpush3.msra.mxu1 %v1439_v54  ;;  %v1427_v25 = vld [vmem:[#allocation11 + $0x10] sm:$0xff] }
 0x6f6   :  { %1722 = vmatprep.subr.mxu0 %v2097_v3  ;;  %1755 = vmatprep.subr.mxu1 %v2097_v3 }
 0x6f7   :  { %1723 = vmatpush3.msra.mxu0 %v1341_v27  ;;  %1756 = vmatpush3.msra.mxu1 %v1438_v11  ;;  %v1426_v27 = vld [vmem:[#allocation11 + $0x8] sm:$0xff] }
 0x6f8   :  { %1724 = vmatprep.subr.mxu0 %v2097_v3  ;;  %1757 = vmatprep.subr.mxu1 %v2097_v3 }
 0x6f9   :  { %1725 = vmatpush3.msra.mxu0 %v1340_v28  ;;  %1758 = vmatpush3.msra.mxu1 %v1437_v2  ;;  %v1425_v28 = vld [vmem:[#allocation11] sm:$0xff] }
 0x6fa   :  { %1726 = vmatprep.subr.mxu0 %v2097_v3  ;;  %1759 = vmatprep.subr.mxu1 %v2097_v3 }
 0x6fb   :  { %1727 = vmatpush3.msra.mxu0 %v1339_v58  ;;  %1760 = vmatpush3.msra.mxu1 %v1436_v48 }
 0x6fc   :  { %1728 = vmatprep.subr.mxu0 %v2097_v3  ;;  %1761 = vmatprep.subr.mxu1 %v2097_v3 }
 0x6fd   :  { %1729 = vmatpush3.msra.mxu0 %v1338_v42  ;;  %1762 = vmatpush3.msra.mxu1 %v1435_v39 }
 0x6fe   :  { %1730 = vmatprep.subr.mxu0 %v2097_v3  ;;  %1763 = vmatprep.subr.mxu1 %v2097_v3 }
 0x6ff   :  { %1731 = vmatpush3.msra.mxu0 %v1337_v43  ;;  %1764 = vmatpush3.msra.mxu1 %v1434_v56 }
 0x700   :  { %1732 = vmatprep.subr.mxu0 %v2097_v3  ;;  %1765 = vmatprep.subr.mxu1 %v2097_v3 }
 0x701   :  { %1733 = vmatpush3.msra.mxu0 %v1336_v44  ;;  %1766 = vmatpush3.msra.mxu1 %v1433_v55 }
 0x702   :  { %1734 = vmatprep.subr.mxu0 %v2097_v3  ;;  %1767 = vmatprep.subr.mxu1 %v2097_v3 }
 0x703   :  { %1735 = vmatpush3.msra.mxu0 %v1335_v41  ;;  %1768 = vmatpush3.msra.mxu1 %v1432_v59 }
 0x704   :  { %1736 = vmatprep.subr.mxu0 %v2097_v3  ;;  %1769 = vmatprep.subr.mxu1 %v2097_v3 }
 0x705   :  { %1737 = vmatpush3.msra.mxu0 %v1334_v45  ;;  %1770 = vmatpush3.msra.mxu1 %v1431_v60  ;;  %v1665_v45 = vld [vmem:[%s2658_s6] ss:$0 sm:$0xff] }
 0x706   :  { %1738 = vmatprep.subr.mxu0 %v2097_v3  ;;  %1771 = vmatprep.subr.mxu1 %v2097_v3 }
 0x707   :  { %1739 = vmatpush3.msra.mxu0 %v1333_v46  ;;  %1772 = vmatpush3.msra.mxu1 %v1430_v57 }
 0x708   :  { %1740 = vmatprep.subr.mxu0 %v2097_v3  ;;  %1773 = vmatprep.subr.mxu1 %v2097_v3 }
 0x709   :  { %1741 = vmatpush3.msra.mxu0 %v1332_v47  ;;  %1774 = vmatpush3.msra.mxu1 %v1429_v61 }
 0x70a   :  { %1742 = vmatprep.subr.mxu0 %v2097_v3  ;;  %1775 = vmatprep.subr.mxu1 %v2097_v3 }
 0x70b   :  { %1743 = vmatpush3.msra.mxu0 %v1331_v51  ;;  %1776 = vmatpush3.msra.mxu1 %v1428_v62 }
 0x70c   :  { %1744 = vmatprep.subr.mxu0 %v2097_v3  ;;  %1777 = vmatprep.subr.mxu1 %v2097_v3 }
 0x70d   :  { %1745 = vmatpush3.msra.mxu0 %v1330_v52  ;;  %1778 = vmatpush3.msra.mxu1 %v1427_v25 }
 0x70e   :  { %1746 = vmatprep.subr.mxu0 %v2097_v3  ;;  %1779 = vmatprep.subr.mxu1 %v2097_v3 }
 0x70f   :  { %1747 = vmatpush3.msra.mxu0 %v1329_v49  ;;  %1780 = vmatpush3.msra.mxu1 %v1426_v27 }
 0x710   :  { %1781 = vmatprep.subr.mxu1 %v2097_v3 }
 0x711   :  { %1782 = vmatpush3.msra.mxu1 %v1425_v28 }
 0x7b0   :  { %v1262_v21 = vpop.f32.mrf.mxu0  ;;  %v1303_v63 = vpop.f32.mrf.mxu1 }
 0x7b1   :  { %v1263_v0 = vadd.f32 %v1262_v21, %v1223_v50  ;;  %v1304_v30 = vadd.f32 %v1303_v63, %v1225_v6 }
 0x7b2   :  { %v1264_v29 = vpop.f32.mrf.mxu0  ;;  %v1305_v38 = vpop.f32.mrf.mxu1 }
 0x7b3   :  { %v1310_v40 = vmul.f32 0.5, %v1263_v0  ;;  %v1265_v5 = vadd.f32 %v1264_v29, %v1224_v31  ;;  %v1306_v33 = vadd.f32 %v1305_v38, %v1226_v32 }
 0x7b4   :  { %v1266_v7 = vpop.f32.mrf.mxu0  ;;  %v1307_v8 = vpop.f32.mrf.mxu1 }
 0x7b5   :  { %1919 = vtanh.f32 %v1310_v40  ;;  %v1314_v9 = vmul.f32 0.5, %v1265_v5  ;;  %v1319_v26 = vmul.f32 0.5, %v1306_v33 }
 0x7b6   :  { %v1267_v4 = vpop.f32.mrf.mxu0  ;;  %v1308_v10 = vpop.f32.mrf.mxu1 }
 0x7b7   :  { %1921 = vtanh.f32 %v1314_v9 }
 0x7b8   :  { %1923 = vtanh.f32 %v1304_v30 }
 0x7b9   :  { %1925 = vtanh.f32 %v1319_v26 }
 0x7c2   :  { %v1920_v34 = vpop.eup %1919 }
 0x7c3   :  { %v1312_v35 = vmul.f32 0.5, %v1920_v34 }
 0x7c4   :  { %v1922_v36 = vpop.eup %1921 }
 0x7c5   :  { %v1313_v37 = vadd.f32 0.5, %v1312_v35  ;;  %v1316_v1 = vmul.f32 0.5, %v1922_v36  ;;  %v1924_v13 = vpop.eup %1923 }
 0x7c6   :  { %v1926_v18 = vpop.eup %1925 }
 0x7c7   :  { %v1317_v12 = vadd.f32 0.5, %v1316_v1  ;;  %v1324_v16 = vmul.f32 %v1924_v13, %v1313_v37  ;;  %v1321_v19 = vmul.f32 0.5, %v1926_v18 }
 0x7c9   :  { %v1323_v14 = vmul.f32 %v1317_v12, %v2607_v15  ;;  %v1322_v20 = vadd.f32 0.5, %v1321_v19  ;;  %v1664_v15 = vld [vmem:[%s2656_s4] ss:$0 sm:$0xff] }
 0x7cb   :  { %v1325_v17 = vadd.f32 %v1324_v16, %v1323_v14 }
 0x7cd   :  { %1927 = vtanh.f32 %v1325_v17 }
 0x7da   :  { %v1928_v22 = vpop.eup %1927 }
 0x7db   :  { %v1327_v23 = vmul.f32 %v1928_v22, %v1322_v20 }
 0x7dd   :  { %1929 = vtanh.f32 %v1327_v23 }
 0x7ea   :  { %v1930_v24 = vpop.eup %1929 }
 0x7eb   :  { %1749 = vmatmul.mubr.f32.vlgmr.msra.gmra.mxu0 %v1930_v24 }
 0x8ab   :  { %v1418_v58 = vpop.f32.mrf.mxu0 }
 0x8ac   :  { %v1419_v42 = vadd.f32 %v1664_v15, %v1418_v58 }
 0x8ad   :  { %v1750_v43 = vpop.f32.mrf.mxu0 }
 0x8ae   :  { %vm1422_vm2 = vcmp.gt.f32.partialorder %v1419_v42, 0.0  ;;  %v1423_v44 = vmul.f32 0.01, %v1419_v42 }
 0x8b0   :  { %v1424_v41 = vsel %vm1422_vm2, %v1419_v42, %v1423_v44 }
 0x8b1   :  { %1784 = vmatmul.mubr.f32.vlgmr.msra.gmra.mxu1 %v1424_v41 }
 0x971   :  { %v1514_v46 = vpop.f32.mrf.mxu1 }
 0x972   :  { %v1515_v3 = vadd.f32 %v1665_v45, %v1514_v46 }
 0x973   :  { %v1785_v47 = vpop.f32.mrf.mxu1 }
 0x974   :  { %1518 = vst [vmem:[#allocation13] sm:$0xff] %v1515_v3 }
 0x975   :  { %2066 = shalt.err (!%p2063_p1)
}
 0x976   :  { %1528 = dma.vmem_to_hbm [thread:$0]  %s1526_s19, 128, %s2659_s7, [#allocation5]  }
 0x977   :  { %2083 = dma.done.wait [#allocation5], 128  }
 0x978   :  { %2084 = vsyncadd [#allocation5], 4294967168 }
 0x979   :  { %1532 = vsyncpa [#allocation4], 1 }
 0x97a   :  { %1533 = vsyncpa [#allocation9], 1 }
 0x97b   :  { %1534 = vsyncpa [#allocation12], 1 }
 0x97c   :  { %1535 = vsyncpa [#allocation5], 1 }
 0x97d   :  { %1536 = vsyncpa [#allocation6], 1 }

</bundles_post_ra>
